<compile_context>
chip_gen: v7x
topology: tpu7x:2x2x1
jax: 0.10.0
libtpu: 0.0.40
codegen_flags: <defaults>
</compile_context>

<pallas_src>
import functools
import numpy as np

import jax
import jax.numpy as jnp
from jax.experimental import pallas as pl
from jax.experimental.pallas import tpu as pltpu


def _round_up(x, m):
    return ((x + m - 1) // m) * m


def _ahle_kernel(x_ref, wb_ref, wn_ref, o_ref, *, degree, dpad, out_scale, fuse_bases):
    # x_ref:  (tm, d_in_pad)
    # wb_ref: (d_in_pad, degree * dpad)      fused base-projection weights (resident)
    # wn_ref: (degree - 1, dpad, dpad)       node-projection weights (resident,
    #                                        pre-scaled by 1/sqrt(d_features))
    # o_ref:  (tm, dpad)
    x = x_ref[...]

    if fuse_bases:
        # One wide MXU call computes all `degree` base projections at once.
        bases = jnp.dot(x, wb_ref[...], preferred_element_type=jnp.float32)
        get_base = lambda i: bases[:, i * dpad:(i + 1) * dpad]
    else:
        # Large degree*dpad: per-base matmuls bound the live f32 scratch while each
        # MXU call stays >= dpad (>=256) lanes wide.
        get_base = lambda i: jnp.dot(x, wb_ref[:, i * dpad:(i + 1) * dpad],
                                     preferred_element_type=jnp.float32)

    sketch = get_base(0)
    for i in range(1, degree):  # unrolled at trace time (degree is a Python int)
        sketch = sketch * get_base(i)
        sketch = jnp.dot(sketch.astype(wn_ref.dtype), wn_ref[i - 1],
                         preferred_element_type=jnp.float32)

    # Only the final /sqrt(d_features) remains here (the per-node ones are folded
    # into the wn weights in the wrapper).
    o_ref[...] = (sketch * out_scale).astype(o_ref.dtype)


def ahle_et_al(x, wb_stack, wn_stack, *, d_features, tm=None,
               compute_dtype=jnp.bfloat16, out_dtype=jnp.float32,
               vmem_limit_bytes=None, single_buffer_weights=True):
    """AhleEtAl forward (tree=False, srht=False) as a single Pallas kernel.

    x:        (N, d_in) float32
    wb_stack: (degree, d_in, d_features)              base projection weights
    wn_stack: (degree - 1, d_features, d_features)    node projection weights
    returns:  (N, d_features) out_dtype
    """
    N, d_in = x.shape
    degree = wb_stack.shape[0]
    assert degree >= 2, "kernel implements the non-trivial degree >= 2 path"
    assert wb_stack.shape == (degree, d_in, d_features)
    assert wn_stack.shape == (degree - 1, d_features, d_features)

    # ---- Hardware-aware defaults (v5e/v6e: 128 MiB VMEM, 1 TC; v7x: 64 MiB, 2 TCs).
    try:
        vmem_cap = int(getattr(pltpu.get_tpu_info(), "vmem_capacity_bytes",
                               64 * 1024 * 1024))
    except Exception:
        vmem_cap = 64 * 1024 * 1024  # conservative fallback
    big_vmem = vmem_cap >= 96 * 1024 * 1024
    if vmem_limit_bytes is None:
        vmem_limit_bytes = (100 if big_vmem else 48) * 1024 * 1024

    # ---- Zero-padding (exact): lane-dense d_in, MXU-friendly d_features.
    d_in_pad = _round_up(d_in, 128)
    dpad = 128 if d_features <= 128 else _round_up(d_features, 256)

    # ---- Row tile: large on 128-MiB chips, 256 on v7x; ensure the grid splits
    # across v7x's two TensorCores when possible.
    if tm is None:
        tm = 512 if big_vmem else 256
    tm = min(tm, N)
    if (not big_vmem) and (N // tm) < 2 and tm % 2 == 0 and tm >= 16:
        tm //= 2
    assert N % tm == 0, "pad N to a multiple of the row tile"

    inv_sqrt_d = 1.0 / float(np.sqrt(d_features))  # original d_features (module semantics)

    # Base weights: pad feature dim and d_in, fuse the `degree` projections along the
    # lane axis so the kernel can do one (tm, d_in_pad) @ (d_in_pad, degree*dpad) matmul.
    wb = wb_stack
    if dpad != d_features:
        wb = jnp.pad(wb, ((0, 0), (0, 0), (0, dpad - d_features)))
    if d_in_pad != d_in:
        wb = jnp.pad(wb, ((0, 0), (0, d_in_pad - d_in), (0, 0)))
    wb_fused = jnp.transpose(wb, (1, 0, 2)).reshape(d_in_pad, degree * dpad)

    # Node weights: fold the per-node 1/sqrt(d_features) into the weights (exact,
    # bounds bf16 dynamic range), then pad to (dpad, dpad).
    wn = wn_stack * inv_sqrt_d
    if dpad != d_features:
        wn = jnp.pad(wn, ((0, 0), (0, dpad - d_features), (0, dpad - d_features)))

    xp = x
    if d_in_pad != d_in:
        xp = jnp.pad(xp, ((0, 0), (0, d_in_pad - d_in)))

    xp = xp.astype(compute_dtype)
    wb_fused = wb_fused.astype(compute_dtype)
    wn = wn.astype(compute_dtype)

    fuse_bases = degree * dpad <= 2048  # bound the f32 `bases` scratch (v7x VMEM)

    # ---- VMEM footprint sanity check (weights resident + streamed x/out + scratch).
    bpe = jnp.dtype(compute_dtype).itemsize
    obpe = jnp.dtype(out_dtype).itemsize
    w_bufs = 1 if single_buffer_weights else 2
    weight_bytes = w_bufs * (d_in_pad * degree * dpad + (degree - 1) * dpad * dpad) * bpe
    scratch_bytes = tm * ((degree if fuse_bases else 2) * dpad) * 4 + tm * dpad * 4
    stream_bytes = 2 * tm * d_in_pad * bpe + 2 * tm * dpad * obpe
    est_bytes = weight_bytes + scratch_bytes + stream_bytes
    # TODO(synk): replace resident wn with a streamed/tiled path when this fires.
    assert est_bytes <= vmem_limit_bytes, (
        f"estimated VMEM {est_bytes} B exceeds limit {vmem_limit_bytes} B; "
        f"reduce tm/d_features or implement the streamed-wn path")

    kernel = functools.partial(_ahle_kernel, degree=degree, dpad=dpad,
                               out_scale=inv_sqrt_d, fuse_bases=fuse_bases)

    def build(weight_pipeline_mode):
        wkw = {} if weight_pipeline_mode is None else {"pipeline_mode": weight_pipeline_mode}
        return pl.pallas_call(
            kernel,
            out_shape=jax.ShapeDtypeStruct((N, dpad), out_dtype),
            grid_spec=pltpu.PrefetchScalarGridSpec(
                num_scalar_prefetch=0,
                grid=(N // tm,),
                in_specs=[
                    # x: one row block per grid step.
                    pl.BlockSpec((tm, d_in_pad), lambda i: (i, 0)),
                    # Weights: full arrays, constant index_map -> resident in VMEM for
                    # the whole grid (no per-row-block re-DMA); single-buffered when
                    # the installed JAX honours pipeline_mode.
                    pl.BlockSpec((d_in_pad, degree * dpad), lambda i: (0, 0), **wkw),
                    pl.BlockSpec((degree - 1, dpad, dpad), lambda i: (0, 0, 0), **wkw),
                ],
                out_specs=pl.BlockSpec((tm, dpad), lambda i: (i, 0)),
            ),
            compiler_params=pltpu.CompilerParams(
                dimension_semantics=("parallel",),
                vmem_limit_bytes=vmem_limit_bytes,
            ),
        )

    if single_buffer_weights:
        try:
            out = jax.block_until_ready(build(pl.Buffered(1))(xp, wb_fused, wn))
        except Exception:
            # pipeline_mode unsupported in this JAX build -> default double-buffering.
            out = build(None)(xp, wb_fused, wn)
    else:
        out = build(None)(xp, wb_fused, wn)

    if dpad != d_features:
        out = out[:, :d_features]
    return out


def ahle_et_al_ref(x, wb_stack, wn_stack, d_features):
    """float64 numpy reference mirroring AhleEtAl.forward (tree=False, srht=False)."""
    x = np.asarray(x, np.float64)
    wb = np.asarray(wb_stack, np.float64)
    wn = np.asarray(wn_stack, np.float64)
    bases = [x @ wb[i] for i in range(wb.shape[0])]
    # base[:, d_features:] = 0 is a no-op since srht=False => proj_dim == d_features.
    sketch = bases[0]
    for i in range(1, len(bases)):
        sketch = sketch * bases[i]
        sketch = (sketch @ wn[i - 1]) / np.sqrt(d_features)
    return sketch[:, :d_features] / np.sqrt(d_features)


if __name__ == "__main__":
    # Small deterministic example consistent with the module: degree=2, d_in=32,
    # d_features=256, N=512 rows.
    N, d_in, d_features, degree = 512, 32, 256, 2

    key = jax.random.PRNGKey(0)
    kx, kb, kn = jax.random.split(key, 3)
    x = jax.random.normal(kx, (N, d_in), dtype=jnp.float32)
    wb_stack = jax.random.normal(kb, (degree, d_in, d_features), dtype=jnp.float32)
    wn_stack = jax.random.normal(kn, (degree - 1, d_features, d_features), dtype=jnp.float32)

    ref = ahle_et_al_ref(x, wb_stack, wn_stack, d_features)

    # Default fast path: bf16 MXU inputs, f32 accumulation. Loose (bf16-level) check.
    out_bf16 = ahle_et_al(x, wb_stack, wn_stack, d_features=d_features)
    out_bf16 = jax.block_until_ready(out_bf16)
    rel = (np.linalg.norm(np.asarray(out_bf16, np.float64) - ref)
           / np.linalg.norm(ref))
    assert rel < 4e-2, f"bf16 path relative Frobenius error too large: {rel}"

    # f32 path: tight correctness check against the float64 reference.
    out_f32 = ahle_et_al(x, wb_stack, wn_stack, d_features=d_features,
                         compute_dtype=jnp.float32)
    out_f32 = jax.block_until_ready(out_f32)
    np.testing.assert_allclose(np.asarray(out_f32), ref, rtol=1e-4, atol=1e-4)

    print("KERNEL_OK")
</pallas_src>

<mosaic_0001>
module attributes {stable_mosaic.version = 11 : i64} {
  func.func @_ahle_kernel(%arg0: i32, %arg1: memref<256x128xbf16, #tpu.memory_space<vmem>>, %arg2: memref<128x512xbf16, #tpu.memory_space<vmem>>, %arg3: memref<1x256x256xbf16, #tpu.memory_space<vmem>>, %arg4: memref<256x256xf32, #tpu.memory_space<vmem>>) attributes {dimension_semantics = [#tpu.dimension_semantics<parallel>], iteration_bounds = array<i64: 2>, scalar_prefetch = 0 : i64, scratch_operands = 0 : i64, tpu.core_type = #tpu.core_type<tc>, window_params = [{transform_indices = @transform_0, window_bounds = array<i64: 256, 128>}, {pipeline_mode = #tpu.pipeline_mode<synchronous>, transform_indices = @transform_1, window_bounds = array<i64: 128, 512>}, {pipeline_mode = #tpu.pipeline_mode<synchronous>, transform_indices = @transform_2, window_bounds = array<i64: 1, 256, 256>}, {transform_indices = @transform_3, window_bounds = array<i64: 256, 256>}]} {
    %c0 = arith.constant 0 : index
    %c0_0 = arith.constant 0 : index
    %0 = vector.load %arg1[%c0, %c0_0] : memref<256x128xbf16, #tpu.memory_space<vmem>>, vector<256x128xbf16>
    %c0_1 = arith.constant 0 : index
    %c0_2 = arith.constant 0 : index
    %1 = vector.load %arg2[%c0_1, %c0_2] : memref<128x512xbf16, #tpu.memory_space<vmem>>, vector<128x512xbf16>
    %cst = arith.constant dense<0.000000e+00> : vector<256x512xf32>
    %2 = tpu.matmul %0, %1, %cst {dimension_numbers = #tpu.dot_dimension_numbers<[1], [0], [0], [1], [0, 0, 1, 1], [], []>} : vector<256x128xbf16>, vector<128x512xbf16>, vector<256x512xf32> -> vector<256x512xf32>
    %3 = vector.extract_strided_slice %2 {offsets = [0, 0], sizes = [256, 256], strides = [1, 1]} : vector<256x512xf32> to vector<256x256xf32>
    %4 = vector.extract_strided_slice %2 {offsets = [0, 256], sizes = [256, 256], strides = [1, 1]} : vector<256x512xf32> to vector<256x256xf32>
    %5 = arith.mulf %3, %4 : vector<256x256xf32>
    %6 = arith.truncf %5 : vector<256x256xf32> to vector<256x256xbf16>
    %c0_3 = arith.constant 0 : index
    %c0_4 = arith.constant 0 : index
    %c0_5 = arith.constant 0 : index
    %7 = vector.load %arg3[%c0_3, %c0_4, %c0_5] : memref<1x256x256xbf16, #tpu.memory_space<vmem>>, vector<1x256x256xbf16>
    %8 = vector.shape_cast %7 : vector<1x256x256xbf16> to vector<256x256xbf16>
    %cst_6 = arith.constant dense<0.000000e+00> : vector<256x256xf32>
    %9 = tpu.matmul %6, %8, %cst_6 {dimension_numbers = #tpu.dot_dimension_numbers<[1], [0], [0], [1], [0, 0, 1, 1], [], []>} : vector<256x256xbf16>, vector<256x256xbf16>, vector<256x256xf32> -> vector<256x256xf32>
    %cst_7 = arith.constant 6.250000e-02 : f32
    %10 = vector.broadcast %cst_7 : f32 to vector<256x256xf32>
    %11 = arith.mulf %9, %10 : vector<256x256xf32>
    %c0_8 = arith.constant 0 : index
    %c0_9 = arith.constant 0 : index
    %12 = vector.load %arg4[%c0_8, %c0_9] : memref<256x256xf32, #tpu.memory_space<vmem>>, vector<256x256xf32>
    tpu.vector_store %arg4[%c0_8, %c0_9], %11 {strides = array<i32>} : memref<256x256xf32, #tpu.memory_space<vmem>>, vector<256x256xf32>,
    return
  }
  func.func @transform_0(%arg0: i32) -> (i32, i32) {
    %c0_i32 = arith.constant 0 : i32
    %c0_i32_0 = arith.constant 0 : i32
    return %arg0, %c0_i32 : i32, i32
  }
  func.func @transform_1(%arg0: i32) -> (i32, i32) {
    %c0_i32 = arith.constant 0 : i32
    %c0_i32_0 = arith.constant 0 : i32
    %c0_i32_1 = arith.constant 0 : i32
    return %c0_i32, %c0_i32_0 : i32, i32
  }
  func.func @transform_2(%arg0: i32) -> (i32, i32, i32) {
    %c0_i32 = arith.constant 0 : i32
    %c0_i32_0 = arith.constant 0 : i32
    %c0_i32_1 = arith.constant 0 : i32
    %c0_i32_2 = arith.constant 0 : i32
    return %c0_i32, %c0_i32_0, %c0_i32_1 : i32, i32, i32
  }
  func.func @transform_3(%arg0: i32) -> (i32, i32) {
    %c0_i32 = arith.constant 0 : i32
    %c0_i32_0 = arith.constant 0 : i32
    return %arg0, %c0_i32 : i32, i32
  }
}

module attributes {stable_mosaic.version = 11 : i64} {
  func.func @_ahle_kernel(%arg0: i32, %arg1: memref<256x128xbf16, #tpu.memory_space<vmem>>, %arg2: memref<128x512xbf16, #tpu.memory_space<vmem>>, %arg3: memref<1x256x256xbf16, #tpu.memory_space<vmem>>, %arg4: memref<256x256xf32, #tpu.memory_space<vmem>>) attributes {dimension_semantics = [#tpu.dimension_semantics<parallel>], iteration_bounds = array<i64: 2>, scalar_prefetch = 0 : i64, scratch_operands = 0 : i64, tpu.core_type = #tpu.core_type<tc>, window_params = [{transform_indices = @transform_0, window_bounds = array<i64: 256, 128>}, {pipeline_mode = #tpu.pipeline_mode<synchronous>, transform_indices = @transform_1, window_bounds = array<i64: 128, 512>}, {pipeline_mode = #tpu.pipeline_mode<synchronous>, transform_indices = @transform_2, window_bounds = array<i64: 1, 256, 256>}, {transform_indices = @transform_3, window_bounds = array<i64: 256, 256>}]} {
    %c0 = arith.constant 0 : index
    %c0_0 = arith.constant 0 : index
    %0 = vector.load %arg1[%c0, %c0_0] : memref<256x128xbf16, #tpu.memory_space<vmem>>, vector<256x128xbf16>
    %c0_1 = arith.constant 0 : index
    %c0_2 = arith.constant 0 : index
    %1 = vector.load %arg2[%c0_1, %c0_2] : memref<128x512xbf16, #tpu.memory_space<vmem>>, vector<128x512xbf16>
    %cst = arith.constant dense<0.000000e+00> : vector<256x512xf32>
    %2 = tpu.matmul %0, %1, %cst {dimension_numbers = #tpu.dot_dimension_numbers<[1], [0], [0], [1], [0, 0, 1, 1], [], []>} : vector<256x128xbf16>, vector<128x512xbf16>, vector<256x512xf32> -> vector<256x512xf32>
    %3 = vector.extract_strided_slice %2 {offsets = [0, 0], sizes = [256, 256], strides = [1, 1]} : vector<256x512xf32> to vector<256x256xf32>
    %4 = vector.extract_strided_slice %2 {offsets = [0, 256], sizes = [256, 256], strides = [1, 1]} : vector<256x512xf32> to vector<256x256xf32>
    %5 = arith.mulf %3, %4 : vector<256x256xf32>
    %6 = arith.truncf %5 : vector<256x256xf32> to vector<256x256xbf16>
    %c0_3 = arith.constant 0 : index
    %c0_4 = arith.constant 0 : index
    %c0_5 = arith.constant 0 : index
    %7 = vector.load %arg3[%c0_3, %c0_4, %c0_5] : memref<1x256x256xbf16, #tpu.memory_space<vmem>>, vector<1x256x256xbf16>
    %8 = vector.shape_cast %7 : vector<1x256x256xbf16> to vector<256x256xbf16>
    %cst_6 = arith.constant dense<0.000000e+00> : vector<256x256xf32>
    %9 = tpu.matmul %6, %8, %cst_6 {dimension_numbers = #tpu.dot_dimension_numbers<[1], [0], [0], [1], [0, 0, 1, 1], [], []>} : vector<256x256xbf16>, vector<256x256xbf16>, vector<256x256xf32> -> vector<256x256xf32>
    %cst_7 = arith.constant 6.250000e-02 : f32
    %10 = vector.broadcast %cst_7 : f32 to vector<256x256xf32>
    %11 = arith.mulf %9, %10 : vector<256x256xf32>
    %c0_8 = arith.constant 0 : index
    %c0_9 = arith.constant 0 : index
    %12 = vector.load %arg4[%c0_8, %c0_9] : memref<256x256xf32, #tpu.memory_space<vmem>>, vector<256x256xf32>
    tpu.vector_store %arg4[%c0_8, %c0_9], %11 {strides = array<i32>} : memref<256x256xf32, #tpu.memory_space<vmem>>, vector<256x256xf32>,
    return
  }
  func.func @transform_0(%arg0: i32) -> (i32, i32) {
    %c0_i32 = arith.constant 0 : i32
    %c0_i32_0 = arith.constant 0 : i32
    return %arg0, %c0_i32 : i32, i32
  }
  func.func @transform_1(%arg0: i32) -> (i32, i32) {
    %c0_i32 = arith.constant 0 : i32
    %c0_i32_0 = arith.constant 0 : i32
    %c0_i32_1 = arith.constant 0 : i32
    return %c0_i32, %c0_i32_0 : i32, i32
  }
  func.func @transform_2(%arg0: i32) -> (i32, i32, i32) {
    %c0_i32 = arith.constant 0 : i32
    %c0_i32_0 = arith.constant 0 : i32
    %c0_i32_1 = arith.constant 0 : i32
    %c0_i32_2 = arith.constant 0 : i32
    return %c0_i32, %c0_i32_0, %c0_i32_1 : i32, i32, i32
  }
  func.func @transform_3(%arg0: i32) -> (i32, i32) {
    %c0_i32 = arith.constant 0 : i32
    %c0_i32_0 = arith.constant 0 : i32
    return %arg0, %c0_i32 : i32, i32
  }
}

</mosaic_0001>

<bundles_post_ra>
// kernel: tpu_custom_call.1
= control target key start
LH: loop header
LB: loop body
LE: loop exit
PB: predicated region body
PF: predicated region fallthrough
CT: control target
= control target key end

     0   :  { %8 = vsyncpa [#allocation3], 0  ;;  %s2724_s0 = inlined_call_operand.hbm [shape: bf16[512,128], index: 0, kind: input, shape index: {}]   ;;  %s2725_s1 = inlined_call_operand.hbm [shape: bf16[128,512], index: 1, kind: input, shape index: {}]   ;;  %s2726_s2 = inlined_call_operand.hbm [shape: bf16[1,256,256], index: 2, kind: input, shape index: {}]   ;;  %s2727_s3 = inlined_call_operand.hbm [shape: f32[512,256], index: 3, kind: output, shape index: {}]  }
   0x1   :  { %10 = vsyncpa [#allocation3 + $0x1], 0 }
   0x2   :  { %11 = vsyncpa [#allocation6], 0 }
   0x3   :  { %12 = vsyncpa [#allocation4], 0 }
   0x4   :  { %14 = vsyncpa [#allocation4 + $0x1], 0  ;;  %s2140_s12 = smov 0   ;;  %s2142_s13 = smov 0  }
   0x5   :  { %s2144_s14 = smov 0   ;;  %s2146_s15 = smov 0  }
   0x6 LB: > { %s2161_s16 = sadd.s32 4294967295, %s2105_s15   ;;  %s1643_s17 = sadd.s32 4294967294, %s2105_s15   ;;  %s2105_s15 = sphi %s2146_s15, %s2777_s15   ;;  %s2101_s14 = sphi %s2144_s14, %s2776_s14   ;;  %s2097_s13 = sphi %s2142_s13, %s2775_s13   ;;  %s2093_s12 = sphi %s2140_s12, %s2774_s12  }
   0x7   : > { %p40_p0 = scmp.ne.s32.totalorder %s2097_s13, %s2093_s12  ;;  %p2728_p1 = scmp.eq.s32.totalorder %s2161_s16, 0 }
   0x8   : > { %p112_p3 = scmp.eq.s32.totalorder %s1643_s17, 1  ;;  %p1644_p5 = scmp.ge.s32.totalorder %s2105_s15, 1 }
   0x9   : > { %p2170_p4 = por %p2728_p1, %p40_p0  ;;  %p119_p7 = scmp.lt.s32.totalorder %s2105_s15, 3 }
   0xa   : > { %p2175_p6 = por %p112_p3, %p40_p0  ;;  %s2107_s21 = smov [#allocation5]  }
   0xb   : > { %s2731_s18 = scalar_select %p2170_p4, 1, 0 }
   0xc   : > { %s2732_s19 = scalar_select %p2175_p6, 1, 0 }
   0xd   : > { %p2180_p8 = pnand %p1644_p5, %p119_p7  ;;  %s131_s22 = sshll.u32 %s2107_s21, 4  ;;  %s2184_s22 = int_to_ptr.vmem [resolvable:$true] %s131_s22 }
   0xe   : > { %s2108_s24 = smov [#allocation7]   ;;  %s1949_s28 = scalar_lea.hbm %s2725_s1, 4096 }
   0xf   : > { %p1773_p9 = pneg %p2180_p8  ;;  %s144_s25 = sshll.u32 %s2108_s24, 4  ;;  %s2195_s25 = int_to_ptr.vmem [resolvable:$true] %s144_s25 }
  0x10   : > { %p1950_p12 = scmp.ne.s32.totalorder %s2725_s1, %s1949_s28  ;;  %p1956_p5 = scmp.lt.u32.totalorder %s1949_s28, %s2725_s1 }
  0x11   : > { %p2191_p11 = pnand %p1773_p9, %p2728_p1 }
  0x13   : > { %p1951_p13 = pneg %p2191_p11 }
  0x15   : > { %p1952_p0 = pnand %p1951_p13, %p1950_p12 }
  0x17   : > { %p1953_p3 = pneg %p1952_p0 }
  0x19   : > { %p1958_p7 = pnand %p1956_p5, %p1953_p3 }
  0x1b   : > { %1961 = shalt.err (!%p1958_p7)
}
  0x1c   : > { %s1962_s6 = scalar_lea.vmem %s2184_s22, 4096  ;;  %p1970_p2 = scmp.lt.s32.totalorder %s2184_s22, %s2184_s22 }
  0x1d   : > { %p1963_p9 = scmp.ne.s32.totalorder %s2184_s22, %s1962_s6  ;;  %p1971_p12 = scmp.lt.s32.totalorder %s1962_s6, %s1962_s6 }
  0x1f   : > { %p1965_p10 = pnand %p1963_p9, %p1951_p13  ;;  %p1972_p0 = por %p1971_p12, %p1970_p2 }
  0x21   : > { %p1966_p1 = pneg %p1965_p10 }
  0x23   : > { %p1973_p6 = pnand %p1972_p0, %p1966_p1 }
  0x25   : > { %1976 = shalt.err (!%p1973_p6)
}
  0x26   : > { %s2109_s7 = smov 256   ;;  %s2110_s8 = smov 16  }
  0x27   : > { %1776 = dma.hbm_to_vmem [thread:$0]  (!%p2191_p11), %s2725_s1, 4096, %s2184_s22, [#allocation6], %s2109_s7, %s2109_s7, %s2110_s8  }
  0x28   : > { %s1977_s21 = scalar_lea.hbm %s2726_s2, 4096 }
  0x29   : > { %p1978_p2 = scmp.ne.s32.totalorder %s2726_s2, %s1977_s21  ;;  %p1984_p10 = scmp.lt.u32.totalorder %s1977_s21, %s2726_s2 }
  0x2b   : > { %p1980_p1 = pnand %p1978_p2, %p1951_p13 }
  0x2d   : > { %p1981_p6 = pneg %p1980_p1 }
  0x2f   : > { %p1986_p3 = pnand %p1984_p10, %p1981_p6 }
  0x31   : > { %1989 = shalt.err (!%p1986_p3)
}
  0x32   : > { %s1990_s22 = scalar_lea.vmem %s2195_s25, 4096  ;;  %p1998_p12 = scmp.lt.s32.totalorder %s2195_s25, %s2195_s25 }
  0x33   : > { %p1991_p5 = scmp.ne.s32.totalorder %s2195_s25, %s1990_s22  ;;  %p1999_p0 = scmp.lt.s32.totalorder %s1990_s22, %s1990_s22 }
  0x35   : > { %p1993_p7 = pnand %p1991_p5, %p1951_p13  ;;  %p2000_p2 = por %p1999_p0, %p1998_p12 }
  0x37   : > { %p1994_p9 = pneg %p1993_p7 }
  0x39   : > { %p2001_p1 = pnand %p2000_p2, %p1994_p9 }
  0x3b   : > { %2004 = shalt.err (!%p2001_p1)
}
  0x3c   : > { %s2111_s29 = smov 128   ;;  %s2112_s30 = smov 8  }
  0x3d   : > { %1779 = dma.hbm_to_vmem [thread:$0]  (!%p2191_p11), %s2726_s2, 4096, %s2195_s25, [#allocation6], %s2111_s29, %s2111_s29, %s2112_s30  }
  0x3e   : > { %s2250_s6 = sadd.s32 1, %s2105_s15   ;;  %s27_s8 = sadd.s32 1, %s2101_s14 }
  0x3f   : > { %s24_s7 = ssub.s32 %s2105_s15, %s2250_s6  ;;  %p34_p6 = scmp.ne.s32.totalorder %s2101_s14, %s2097_s13 }
  0x40   : > { %p25_p13 = scmp.eq.s32.totalorder %s24_s7, 0  ;;  %p35_p10 = scmp.eq.s32.totalorder %s2105_s15, 0 }
  0x41   : > { %p2735_p5 = scmp.eq.s32.totalorder %s2161_s16, 1  ;;  %p1790_p9 = scmp.lt.s32.totalorder %s2105_s15, 2 }
  0x42   : > { %s2259_s9 = scalar_select %p25_p13, %s2101_s14, %s27_s8  }
  0x43   : > { %p36_p3 = por %p35_p10, %p34_p6  ;;  %p2263_p7 = por %p2735_p5, %p34_p6 }
  0x44   : > { %s158_s23 = sand.u32 1, %s2101_s14   ;;  %s1742_s25 = sshll.u32 %s2105_s15, 11 }
  0x45   : > { %s2736_s10 = scalar_select %p2263_p7, 1, 0 }
  0x46   : > { %s1648_s11 = sshll.u32 %s158_s23, 7  ;;  %s2273_s24 = scalar_lea.hbm %s2724_s0, %s1742_s25 }
  0x47   : > { %s162_s26 = scalar_lea.vmem [#allocation2], %s1648_s11  ;;  %p2277_p11 = pnand %p1790_p9, %p36_p3 }
  0x48   : > { %s169_s27 = sshll.u32 %s162_s26, 4  ;;  %s2281_s22 = scalar_lea.sflag [#allocation3], %s158_s23  ;;  %s2275_s27 = int_to_ptr.vmem [resolvable:$true] %s169_s27 }
  0x49   : > { %s2005_s29 = scalar_lea.hbm %s2273_s24, 2048  ;;  %p2007_p0 = pneg %p2277_p11 }
  0x4a   : > { %p2006_p12 = scmp.ne.s32.totalorder %s2273_s24, %s2005_s29  ;;  %s2010_s5 = scalar_lea.hbm %s2724_s0, 4096 }
  0x4b   : > { %p2011_p13 = scmp.lt.u32.totalorder %s2273_s24, %s2724_s0  ;;  %p2012_p6 = scmp.lt.u32.totalorder %s2010_s5, %s2005_s29 }
  0x4c   : > { %p2008_p2 = pnand %p2007_p0, %p2006_p12  ;;  %p2014_p3 = scmp.lt.u32.totalorder %s2005_s29, %s2273_s24 }
  0x4d   : > { %p2013_p10 = por %p2012_p6, %p2011_p13 }
  0x4e   : > { %p2009_p1 = pneg %p2008_p2 }
  0x4f   : > { %p2015_p5 = por %p2014_p3, %p2013_p10 }
  0x51   : > { %p2016_p9 = pnand %p2015_p5, %p2009_p1 }
  0x53   : > { %2019 = shalt.err (!%p2016_p9)
}
  0x54   : > { %s2020_s23 = scalar_lea.vmem %s2275_s27, 2048  ;;  %s2113_s11 = smov [#allocation2]  }
  0x55   : > { %p2021_p12 = scmp.ne.s32.totalorder %s2275_s27, %s2020_s23  ;;  %s2025_s25 = sshll.u32 %s2113_s11, 4  ;;  %s2026_s25 = int_to_ptr.vmem [resolvable:$false] %s2025_s25 }
  0x56   : > { %s2027_s17 = scalar_lea.vmem %s2026_s25, 4096  ;;  %p2028_p4 = scmp.lt.s32.totalorder %s2275_s27, %s2026_s25 }
  0x57   : > { %p2023_p2 = pnand %p2021_p12, %p2007_p0  ;;  %p2029_p13 = scmp.lt.s32.totalorder %s2027_s17, %s2020_s23 }
  0x59   : > { %p2024_p7 = pneg %p2023_p2  ;;  %p2030_p6 = por %p2029_p13, %p2028_p4 }
  0x5b   : > { %p2031_p10 = pnand %p2030_p6, %p2024_p7 }
  0x5d   : > { %2034 = shalt.err (!%p2031_p10)
}
  0x5e   : > { %s2114_s21 = smov 64   ;;  %s2115_s26 = smov 4  }
  0x5f   : > { %1783 = dma.hbm_to_vmem [thread:$0]  (!%p2277_p11), %s2273_s24, 2048, %s2275_s27, %s2281_s22, %s2114_s21, %s2114_s21, %s2115_s26  }
  0x60   : > { %181 = sbr.rel (%p2180_p8) target bundleno = 780 (0x30c), region = 32 }
  0x67   : > { %s2312_s29 = sand.u32 1, %s2097_s13   ;;  %p2738_p4 = scmp.ne.s32.totalorder %s2731_s18, 0 }
  0x68   : > { %s1652_s30 = sshll.u32 %s2312_s29, 7  ;;  %s184_s4 = scalar_lea.sflag [#allocation3], %s2312_s29 }
  0x69   : > { %s2316_s5 = scalar_lea.vmem [#allocation2], %s1652_s30 }
  0x6a   : > { %2080 = dma.done.wait (%p2738_p4), %s184_s4, 2048  }
  0x6b   : > { %2082 = vsyncadd (%p2738_p4), %s184_s4, 4294965248  ;;  %p2739_p7 = scmp.eq.s32.totalorder %s2161_s16, 0 }
  0x6d   : > { %2084 = dma.done.wait (%p2739_p7), [#allocation6], 8192   ;;  %p2740_p8 = pmov %p2739_p7 }
  0x6e   : > { %v2116_v0 = vmov 0   ;;  %v1837_v1 = vld [vmem:[#allocation5 + $0x4] ss:$16 sps:$4 sm:$0xff]   ;;  %v1839_v2 = vld [vmem:[#allocation5] ss:$16 sps:$4 sm:$0xff]   ;;  %v2338_v23 = vld [vmem:[%s2316_s5 + $0x48] sm:$0xff]  }
  0x6f   : > { %2086 = vsyncadd (%p2740_p8), [#allocation6], 4294959104  ;;  %653 = vmatprep.mubr.bf16.mxu1 %v2116_v0  ;;  %573 = vmatprep.mubr.bf16.mxu0 %v2116_v0  ;;  %v1840_v3 = vld [vmem:[#allocation5 + $0x24] ss:$16 sps:$4 sm:$0xff]   ;;  %v1842_v4 = vld [vmem:[#allocation5 + $0x20] ss:$16 sps:$4 sm:$0xff]  }
  0x70   : > { %1745 = vmatprep.subr.bf16.mxu1 %v1837_v1  ;;  %541 = vmatprep.subr.bf16.mxu0 %v1837_v1  ;;  %v1843_v5 = vld [vmem:[#allocation5 + $0x44] ss:$16 sps:$4 sm:$0xff]   ;;  %v1845_v6 = vld [vmem:[#allocation5 + $0x40] ss:$16 sps:$4 sm:$0xff]   ;;  %v1864_v17 = vld [vmem:[#allocation5 + $0xc] ss:$16 sps:$4 sm:$0xff]  }
  0x71   : > { %1753 = vmatpush1.bf16.msra.mxu1 %v1839_v2  ;;  %542 = vmatpush1.bf16.msra.mxu0 %v1839_v2  ;;  %v1846_v7 = vld [vmem:[#allocation5 + $0x64] ss:$16 sps:$4 sm:$0xff]   ;;  %v1848_v8 = vld [vmem:[#allocation5 + $0x60] ss:$16 sps:$4 sm:$0xff]   ;;  %v1862_v20 = vld [vmem:[#allocation5 + $0x8] ss:$16 sps:$4 sm:$0xff]  }
  0x72   : > { %1746 = vmatprep.subr.bf16.mxu1 %v1840_v3  ;;  %543 = vmatprep.subr.bf16.mxu0 %v1840_v3  ;;  %v1849_v9 = vld [vmem:[#allocation5 + $0x84] ss:$16 sps:$4 sm:$0xff]   ;;  %v1851_v10 = vld [vmem:[#allocation5 + $0x80] ss:$16 sps:$4 sm:$0xff]   ;;  %v1868_v21 = vld [vmem:[#allocation5 + $0x2c] ss:$16 sps:$4 sm:$0xff]  }
  0x73   : > { %v1852_v11 = vld [vmem:[#allocation5 + $0xa4] ss:$16 sps:$4 sm:$0xff]   ;;  %v1854_v12 = vld [vmem:[#allocation5 + $0xa0] ss:$16 sps:$4 sm:$0xff]   ;;  %v1866_v22 = vld [vmem:[#allocation5 + $0x28] ss:$16 sps:$4 sm:$0xff]  }
  0x74   : > { %v1855_v13 = vld [vmem:[#allocation5 + $0xc4] ss:$16 sps:$4 sm:$0xff]   ;;  %v1857_v14 = vld [vmem:[#allocation5 + $0xc0] ss:$16 sps:$4 sm:$0xff]   ;;  %v1872_v24 = vld [vmem:[#allocation5 + $0x4c] ss:$16 sps:$4 sm:$0xff]  }
  0x75   : > { %1754 = vmatpush1.bf16.msra.mxu1 %v1842_v4  ;;  %544 = vmatpush1.bf16.msra.mxu0 %v1842_v4  ;;  %v1858_v15 = vld [vmem:[#allocation5 + $0xe4] ss:$16 sps:$4 sm:$0xff]   ;;  %v1860_v16 = vld [vmem:[#allocation5 + $0xe0] ss:$16 sps:$4 sm:$0xff]   ;;  %v1870_v25 = vld [vmem:[#allocation5 + $0x48] ss:$16 sps:$4 sm:$0xff]  }
  0x76   : > { %1747 = vmatprep.subr.bf16.mxu1 %v1843_v5  ;;  %545 = vmatprep.subr.bf16.mxu0 %v1843_v5  ;;  %v2329_v18 = vld [vmem:[%s2316_s5 + $0x40] sm:$0xff]   ;;  %v2342_v26 = vld [vmem:[%s2316_s5 + $0x8] sm:$0xff]   ;;  %v2348_v30 = vld [vmem:[%s2316_s5 + $0x50] sm:$0xff]   ;;  %s1655_s18 = sshll.u32 %s2312_s29, 9  ;;  %s1744_s24 = sshll.u32 %s2161_s16, 13 }
  0x77   : > { %v2332_v19 = vld [vmem:[%s2316_s5] sm:$0xff]   ;;  %v1876_v27 = vld [vmem:[#allocation5 + $0x6c] ss:$16 sps:$4 sm:$0xff]   ;;  %v1874_v28 = vld [vmem:[#allocation5 + $0x68] ss:$16 sps:$4 sm:$0xff]   ;;  %s2607_s20 = scalar_lea.vmem [#allocation8], %s1655_s18  ;;  %s2675_s7 = scalar_lea.hbm %s2727_s3, %s1744_s24 }
  0x78   : > { %v1880_v29 = vld [vmem:[#allocation5 + $0x8c] ss:$16 sps:$4 sm:$0xff]   ;;  %v1895_v31 = vld [vmem:[%s2316_s5 + $0x10] sm:$0xff]   ;;  %v1878_v32 = vld [vmem:[#allocation5 + $0x88] ss:$16 sps:$4 sm:$0xff]   ;;  %s1551_s27 = sshll.u32 %s2607_s20, 4  ;;  %s2677_s27 = int_to_ptr.vmem [resolvable:$true] %s1551_s27 }
  0x79   : > { %1755 = vmatpush1.bf16.msra.mxu1 %v1845_v6  ;;  %546 = vmatpush1.bf16.msra.mxu0 %v1845_v6  ;;  %v1884_v33 = vld [vmem:[#allocation5 + $0xac] ss:$16 sps:$4 sm:$0xff]   ;;  %v1882_v34 = vld [vmem:[#allocation5 + $0xa8] ss:$16 sps:$4 sm:$0xff]   ;;  %v2363_v41 = vld [vmem:[%s2316_s5 + $0x60] sm:$0xff]   ;;  %s1537_s16 = scalar_lea.sflag [#allocation4], %s2312_s29 }
  0x7a   : > { %1748 = vmatprep.subr.bf16.mxu1 %v1846_v7  ;;  %547 = vmatprep.subr.bf16.mxu0 %v1846_v7  ;;  %v1888_v35 = vld [vmem:[#allocation5 + $0xcc] ss:$16 sps:$4 sm:$0xff]   ;;  %v1886_v38 = vld [vmem:[#allocation5 + $0xc8] ss:$16 sps:$4 sm:$0xff]   ;;  %v1897_v42 = vld [vmem:[%s2316_s5 + $0x20] sm:$0xff]   ;;  %s2035_s8 = scalar_lea.vmem %s2677_s27, 8192 }
  0x7b   : > { %v2356_v36 = vld [vmem:[%s2316_s5 + $0x58] sm:$0xff]   ;;  %v2370_v43 = vld [vmem:[%s2316_s5 + $0x68] sm:$0xff]   ;;  %v2377_v45 = vld [vmem:[%s2316_s5 + $0x70] sm:$0xff]   ;;  %p2036_p11 = scmp.ne.s32.totalorder %s2677_s27, %s2035_s8  ;;  %p2771_p0 = scmp.ne.s32.totalorder %s2736_s10, 0 }
  0x7c   : > { %v1896_v37 = vld [vmem:[%s2316_s5 + $0x18] sm:$0xff]   ;;  %v1898_v44 = vld [vmem:[%s2316_s5 + $0x28] sm:$0xff]   ;;  %v1899_v46 = vld [vmem:[%s2316_s5 + $0x30] sm:$0xff]   ;;  %s2117_s23 = smov [#allocation8]  }
  0x7d   : > { %1756 = vmatpush1.bf16.msra.mxu1 %v1848_v8  ;;  %548 = vmatpush1.bf16.msra.mxu0 %v1848_v8  ;;  %v1892_v39 = vld [vmem:[#allocation5 + $0xec] ss:$16 sps:$4 sm:$0xff]   ;;  %v1890_v40 = vld [vmem:[#allocation5 + $0xe8] ss:$16 sps:$4 sm:$0xff]   ;;  %p2037_p1 = pnand %p2036_p11, %p2771_p0  ;;  %s2039_s11 = sshll.u32 %s2117_s23, 4  ;;  %s2040_s11 = int_to_ptr.vmem [resolvable:$false] %s2039_s11 }
  0x7e   : > { %1749 = vmatprep.subr.bf16.mxu1 %v1849_v9  ;;  %549 = vmatprep.subr.bf16.mxu0 %v1849_v9  ;;  %v2384_v47 = vld [vmem:[%s2316_s5 + $0x78] sm:$0xff]   ;;  %v1903_v49 = vld [vmem:[#allocation7 + $0x4] ss:$8 sps:$4 sm:$0xff]   ;;  %v1901_v50 = vld [vmem:[#allocation7] ss:$8 sps:$4 sm:$0xff]   ;;  %s2041_s25 = scalar_lea.vmem %s2040_s11, 16384  ;;  %p2042_p5 = scmp.lt.s32.totalorder %s2677_s27, %s2040_s11 }
  0x7f   : > { %v1900_v48 = vld [vmem:[%s2316_s5 + $0x38] sm:$0xff]   ;;  %v1909_v53 = vld [vmem:[#allocation7 + $0x24] ss:$8 sps:$4 sm:$0xff]   ;;  %v1907_v54 = vld [vmem:[#allocation7 + $0x20] ss:$8 sps:$4 sm:$0xff]   ;;  %p2038_p3 = pneg %p2037_p1  ;;  %p2043_p9 = scmp.lt.s32.totalorder %s2041_s25, %s2035_s8 }
  0x80   : > { %v1904_v51 = vld [vmem:[#allocation7 + $0x10] ss:$8 sps:$4 sm:$0xff]   ;;  %v1906_v52 = vld [vmem:[#allocation7 + $0x14] ss:$8 sps:$4 sm:$0xff]   ;;  %v1915_v57 = vld [vmem:[#allocation7 + $0x44] ss:$8 sps:$4 sm:$0xff]  }
  0x81   : > { %1757 = vmatpush1.bf16.msra.mxu1 %v1851_v10  ;;  %550 = vmatpush1.bf16.msra.mxu0 %v1851_v10  ;;  %v1910_v55 = vld [vmem:[#allocation7 + $0x30] ss:$8 sps:$4 sm:$0xff]   ;;  %v1912_v56 = vld [vmem:[#allocation7 + $0x34] ss:$8 sps:$4 sm:$0xff]   ;;  %v1913_v58 = vld [vmem:[#allocation7 + $0x40] ss:$8 sps:$4 sm:$0xff]   ;;  %p2044_p12 = por %p2043_p9, %p2042_p5 }
  0x82   : > { %1750 = vmatprep.subr.bf16.mxu1 %v1852_v11  ;;  %551 = vmatprep.subr.bf16.mxu0 %v1852_v11  ;;  %v1916_v59 = vld [vmem:[#allocation7 + $0x50] ss:$8 sps:$4 sm:$0xff]   ;;  %v1918_v60 = vld [vmem:[#allocation7 + $0x54] ss:$8 sps:$4 sm:$0xff]   ;;  %v1921_v61 = vld [vmem:[#allocation7 + $0x64] ss:$8 sps:$4 sm:$0xff]  }
  0x83   : > { %v1919_v62 = vld [vmem:[#allocation7 + $0x60] ss:$8 sps:$4 sm:$0xff]   ;;  %v1922_v63 = vld [vmem:[#allocation7 + $0x70] ss:$8 sps:$4 sm:$0xff]   ;;  %v1924_v1 = vld [vmem:[#allocation7 + $0x74] ss:$8 sps:$4 sm:$0xff]   ;;  %p2045_p2 = pnand %p2044_p12, %p2038_p3 }
  0x84   : > { %v1927_v2 = vld [vmem:[#allocation7 + $0x84] ss:$8 sps:$4 sm:$0xff]   ;;  %v1925_v3 = vld [vmem:[#allocation7 + $0x80] ss:$8 sps:$4 sm:$0xff]   ;;  %v1928_v4 = vld [vmem:[#allocation7 + $0x90] ss:$8 sps:$4 sm:$0xff]  }
  0x85   : > { %1758 = vmatpush1.bf16.msra.mxu1 %v1854_v12  ;;  %552 = vmatpush1.bf16.msra.mxu0 %v1854_v12  ;;  %v1930_v5 = vld [vmem:[#allocation7 + $0x94] ss:$8 sps:$4 sm:$0xff]   ;;  %v1933_v6 = vld [vmem:[#allocation7 + $0xa4] ss:$8 sps:$4 sm:$0xff]   ;;  %v1931_v7 = vld [vmem:[#allocation7 + $0xa0] ss:$8 sps:$4 sm:$0xff]  }
  0x86   : > { %1751 = vmatprep.subr.bf16.mxu1 %v1855_v13  ;;  %553 = vmatprep.subr.bf16.mxu0 %v1855_v13  ;;  %v1934_v8 = vld [vmem:[#allocation7 + $0xb0] ss:$8 sps:$4 sm:$0xff]   ;;  %v1936_v9 = vld [vmem:[#allocation7 + $0xb4] ss:$8 sps:$4 sm:$0xff]   ;;  %v1939_v10 = vld [vmem:[#allocation7 + $0xc4] ss:$8 sps:$4 sm:$0xff]  }
  0x87   : > { %v1937_v11 = vld [vmem:[#allocation7 + $0xc0] ss:$8 sps:$4 sm:$0xff]   ;;  %v1940_v12 = vld [vmem:[#allocation7 + $0xd0] ss:$8 sps:$4 sm:$0xff]   ;;  %v1942_v13 = vld [vmem:[#allocation7 + $0xd4] ss:$8 sps:$4 sm:$0xff]  }
  0x89   : > { %1759 = vmatpush1.bf16.msra.mxu1 %v1857_v14  ;;  %554 = vmatpush1.bf16.msra.mxu0 %v1857_v14  ;;  %v1945_v14 = vld [vmem:[#allocation7 + $0xe4] ss:$8 sps:$4 sm:$0xff]  }
  0x8a   : > { %1752 = vmatprep.subr.bf16.mxu1 %v1858_v15  ;;  %555 = vmatprep.subr.bf16.mxu0 %v1858_v15  ;;  %v1943_v15 = vld [vmem:[#allocation7 + $0xe0] ss:$8 sps:$4 sm:$0xff]  }
  0x8d   : > { %1760 = vmatpush1.bf16.msra.mxu1 %v1860_v16  ;;  %556 = vmatpush1.bf16.msra.mxu0 %v1860_v16  ;;  %v1948_v16 = vld [vmem:[#allocation7 + $0xf4] ss:$8 sps:$4 sm:$0xff]  }
  0x8e   : > { %734 = vmatprep.subr.bf16.mxu1 %v1864_v17  ;;  %1215 = vmatprep.subr.bf16.mxu0 %v1903_v49  ;;  %v1946_v17 = vld [vmem:[#allocation7 + $0xf0] ss:$8 sps:$4 sm:$0xff]  }
  0x90   : > { %654 = vmatmul.mubr.bf16.vlgmr.msra.gmra.mrb[0].mxu1 %v2329_v18  ;;  %574 = vmatmul.mubr.bf16.vlgmr.msra.gmra.mrb[0].mxu0 %v2332_v19 }
  0x91   : > { %735 = vmatpush1.bf16.msra.mxu1 %v1862_v20  ;;  %663 = vmatprep.mubr.bf16.mxu1 %v2116_v0 }
  0x92   : > { %736 = vmatprep.subr.bf16.mxu1 %v1868_v21  ;;  %583 = vmatprep.mubr.bf16.mxu0 %v2116_v0 }
  0x93   : > { %1216 = vmatpush1.bf16.msra.mxu0 %v1901_v50 }
  0x94   : > { %1217 = vmatprep.subr.bf16.mxu0 %v1906_v52 }
  0x95   : > { %737 = vmatpush1.bf16.msra.mxu1 %v1866_v22 }
  0x96   : > { %738 = vmatprep.subr.bf16.mxu1 %v1872_v24 }
  0x97   : > { %1218 = vmatpush1.bf16.msra.mxu0 %v1904_v51 }
  0x98   : > { %664 = vmatmul.mubr.bf16.gmra.mrb[4].mxu1 %v2338_v23  ;;  %584 = vmatmul.mubr.bf16.gmra.mrb[4].mxu0 %v2342_v26 }
  0x99   : > { %673 = vmatprep.mubr.bf16.mxu1 %v2116_v0  ;;  %739 = vmatpush1.bf16.msra.mxu1 %v1870_v25 }
  0x9a   : > { %740 = vmatprep.subr.bf16.mxu1 %v1876_v27  ;;  %593 = vmatprep.mubr.bf16.mxu0 %v2116_v0 }
  0x9b   : > { %1219 = vmatprep.subr.bf16.mxu0 %v1909_v53 }
  0x9c   : > { %1220 = vmatpush1.bf16.msra.mxu0 %v1907_v54 }
  0x9d   : > { %741 = vmatpush1.bf16.msra.mxu1 %v1874_v28  ;;  %1221 = vmatprep.subr.bf16.mxu0 %v1912_v56 }
  0x9e   : > { %742 = vmatprep.subr.bf16.mxu1 %v1880_v29 }
  0xa0   : > { %674 = vmatmul.mubr.bf16.gmra.mrb[8].mxu1 %v2348_v30  ;;  %594 = vmatmul.mubr.bf16.gmra.mrb[8].mxu0 %v1895_v31 }
  0xa1   : > { %683 = vmatprep.mubr.bf16.mxu1 %v2116_v0  ;;  %743 = vmatpush1.bf16.msra.mxu1 %v1878_v32 }
  0xa2   : > { %744 = vmatprep.subr.bf16.mxu1 %v1884_v33  ;;  %603 = vmatprep.mubr.bf16.mxu0 %v2116_v0 }
  0xa3   : > { %1222 = vmatpush1.bf16.msra.mxu0 %v1910_v55 }
  0xa4   : > { %1223 = vmatprep.subr.bf16.mxu0 %v1915_v57 }
  0xa5   : > { %745 = vmatpush1.bf16.msra.mxu1 %v1882_v34 }
  0xa6   : > { %746 = vmatprep.subr.bf16.mxu1 %v1888_v35 }
  0xa7   : > { %1224 = vmatpush1.bf16.msra.mxu0 %v1913_v58 }
  0xa8   : > { %684 = vmatmul.mubr.bf16.gmra.mrb[12].mxu1 %v2356_v36  ;;  %604 = vmatmul.mubr.bf16.gmra.mrb[12].mxu0 %v1896_v37 }
  0xa9   : > { %693 = vmatprep.mubr.bf16.mxu1 %v2116_v0  ;;  %747 = vmatpush1.bf16.msra.mxu1 %v1886_v38 }
  0xaa   : > { %748 = vmatprep.subr.bf16.mxu1 %v1892_v39  ;;  %613 = vmatprep.mubr.bf16.mxu0 %v2116_v0 }
  0xab   : > { %1225 = vmatprep.subr.bf16.mxu0 %v1918_v60 }
  0xac   : > { %1226 = vmatpush1.bf16.msra.mxu0 %v1916_v59 }
  0xad   : > { %749 = vmatpush1.bf16.msra.mxu1 %v1890_v40  ;;  %1227 = vmatprep.subr.bf16.mxu0 %v1921_v61 }
  0xb0   : > { %694 = vmatmul.mubr.bf16.gmra.mrb[16].mxu1 %v2363_v41  ;;  %614 = vmatmul.mubr.bf16.gmra.mrb[16].mxu0 %v1897_v42 }
  0xb1   : > { %703 = vmatprep.mubr.bf16.mxu1 %v2116_v0  ;;  %623 = vmatprep.mubr.bf16.mxu0 %v2116_v0 }
  0xb2   : > { %1228 = vmatpush1.bf16.msra.mxu0 %v1919_v62 }
  0xb3   : > { %1229 = vmatprep.subr.bf16.mxu0 %v1924_v1 }
  0xb6   : > { %1230 = vmatpush1.bf16.msra.mxu0 %v1922_v63 }
  0xb7   : > { %1231 = vmatprep.subr.bf16.mxu0 %v1927_v2 }
  0xb8   : > { %704 = vmatmul.mubr.bf16.gmra.mrb[20].mxu1 %v2370_v43  ;;  %624 = vmatmul.mubr.bf16.gmra.mrb[20].mxu0 %v1898_v44 }
  0xb9   : > { %713 = vmatprep.mubr.bf16.mxu1 %v2116_v0  ;;  %633 = vmatprep.mubr.bf16.mxu0 %v2116_v0 }
  0xba   : > { %1232 = vmatpush1.bf16.msra.mxu0 %v1925_v3 }
  0xbb   : > { %1233 = vmatprep.subr.bf16.mxu0 %v1930_v5 }
  0xbe   : > { %1234 = vmatpush1.bf16.msra.mxu0 %v1928_v4 }
  0xbf   : > { %1235 = vmatprep.subr.bf16.mxu0 %v1933_v6 }
  0xc0   : > { %714 = vmatmul.mubr.bf16.gmra.mrb[24].mxu1 %v2377_v45  ;;  %634 = vmatmul.mubr.bf16.gmra.mrb[24].mxu0 %v1899_v46 }
  0xc1   : > { %723 = vmatprep.mubr.bf16.mxu1 %v2116_v0  ;;  %643 = vmatprep.mubr.bf16.mxu0 %v2116_v0 }
  0xc2   : > { %1236 = vmatpush1.bf16.msra.mxu0 %v1931_v7 }
  0xc3   : > { %1237 = vmatprep.subr.bf16.mxu0 %v1936_v9 }
  0xc6   : > { %1238 = vmatpush1.bf16.msra.mxu0 %v1934_v8 }
  0xc7   : > { %1239 = vmatprep.subr.bf16.mxu0 %v1939_v10 }
  0xc8   : > { %724 = vmatmul.mubr.bf16.gmra.mrb[28].mxu1 %v2384_v47  ;;  %644 = vmatmul.mubr.bf16.gmra.mrb[28].mxu0 %v1900_v48 }
  0xc9   : > { %766 = vmatprep.mubr.bf16.mxu1 %v2116_v0 }
  0xca   : > { %1240 = vmatpush1.bf16.msra.mxu0 %v1937_v11 }
  0xcb   : > { %1241 = vmatprep.subr.bf16.mxu0 %v1942_v13 }
  0xce   : > { %1242 = vmatpush1.bf16.msra.mxu0 %v1940_v12 }
  0xcf   : > { %1243 = vmatprep.subr.bf16.mxu0 %v1945_v14 }
  0xd0   : > { %767 = vmatmul.mubr.bf16.vlgmr.msra.gmra.mrb[32].mxu1 %v2332_v19 }
  0xd1   : > { %776 = vmatprep.mubr.bf16.mxu1 %v2116_v0 }
  0xd2   : > { %1244 = vmatpush1.bf16.msra.mxu0 %v1943_v15 }
  0xd3   : > { %1245 = vmatprep.subr.bf16.mxu0 %v1948_v16 }
  0xd6   : > { %1246 = vmatpush1.bf16.msra.mxu0 %v1946_v17 }
  0xd8   : > { %777 = vmatmul.mubr.bf16.gmra.mrb[36].mxu1 %v2342_v26 }
  0xd9   : > { %786 = vmatprep.mubr.bf16.mxu1 %v2116_v0 }
  0xe0   : > { %787 = vmatmul.mubr.bf16.gmra.mrb[40].mxu1 %v1895_v31 }
  0xe1   : > { %796 = vmatprep.mubr.bf16.mxu1 %v2116_v0 }
  0xe8   : > { %797 = vmatmul.mubr.bf16.gmra.mrb[44].mxu1 %v1896_v37 }
  0xe9   : > { %806 = vmatprep.mubr.bf16.mxu1 %v2116_v0 }
  0xf0   : > { %807 = vmatmul.mubr.bf16.gmra.mrb[48].mxu1 %v1897_v42 }
  0xf1   : > { %816 = vmatprep.mubr.bf16.mxu1 %v2116_v0 }
  0xf8   : > { %817 = vmatmul.mubr.bf16.gmra.mrb[52].mxu1 %v1898_v44 }
  0xf9   : > { %826 = vmatprep.mubr.bf16.mxu1 %v2116_v0 }
 0x100   : > { %827 = vmatmul.mubr.bf16.gmra.mrb[56].mxu1 %v1899_v46 }
 0x101   : > { %836 = vmatprep.mubr.bf16.mxu1 %v2116_v0 }
 0x108   : > { %837 = vmatmul.mubr.bf16.gmra.mrb[60].mxu1 %v1900_v48 }
 0x109   : > { %846 = vmatprep.mubr.bf16.mxu1 %v2116_v0 }
 0x110   : > { %847 = vmatmul.mubr.bf16.gmra.mrb[64].mxu1 %v2329_v18 }
 0x111   : > { %856 = vmatprep.mubr.bf16.mxu1 %v2116_v0 }
 0x118   : > { %857 = vmatmul.mubr.bf16.gmra.mrb[68].mxu1 %v2338_v23 }
 0x119   : > { %866 = vmatprep.mubr.bf16.mxu1 %v2116_v0 }
 0x120   : > { %867 = vmatmul.mubr.bf16.gmra.mrb[72].mxu1 %v2348_v30 }
 0x121   : > { %876 = vmatprep.mubr.bf16.mxu1 %v2116_v0 }
 0x128   : > { %877 = vmatmul.mubr.bf16.gmra.mrb[76].mxu1 %v2356_v36 }
 0x129   : > { %886 = vmatprep.mubr.bf16.mxu1 %v2116_v0 }
 0x130   : > { %887 = vmatmul.mubr.bf16.gmra.mrb[80].mxu1 %v2363_v41 }
 0x131   : > { %896 = vmatprep.mubr.bf16.mxu1 %v2116_v0 }
 0x138   : > { %897 = vmatmul.mubr.bf16.gmra.mrb[84].mxu1 %v2370_v43 }
 0x139   : > { %906 = vmatprep.mubr.bf16.mxu1 %v2116_v0 }
 0x140   : > { %907 = vmatmul.mubr.bf16.gmra.mrb[88].mxu1 %v2377_v45 }
 0x141   : > { %916 = vmatprep.mubr.bf16.mxu1 %v2116_v0 }
 0x148   : > { %917 = vmatmul.mubr.bf16.gmra.mrb[92].mxu1 %v2384_v47 }
 0x163   : > { %v2414_v18 = vpop.f32.mrb[0].mxu1  ;;  %v2416_v19 = vpop.f32.mrb[0].mxu0 }
 0x164   : > { %v2418_v20 = vpop.f32.mrb[1].mxu1  ;;  %v2420_v21 = vpop.f32.mrb[1].mxu0 }
 0x165   : > { %v2422_v22 = vpop.f32.mrb[2].mxu1  ;;  %v2424_v23 = vpop.f32.mrb[2].mxu0 }
 0x166   : > { %v2426_v24 = vpop.f32.mrb[3].mxu1  ;;  %v2428_v25 = vpop.f32.mrb[3].mxu0 }
 0x16b   : > { %v2430_v26 = vpop.f32.mrb[4].mxu1  ;;  %v2432_v0 = vpop.f32.mrb[4].mxu0 }
 0x16c   : > { %v2434_v27 = vpop.f32.mrb[5].mxu1  ;;  %v2436_v28 = vpop.f32.mrb[5].mxu0 }
 0x16d   : > { %v2438_v29 = vpop.f32.mrb[6].mxu1  ;;  %v2440_v30 = vpop.f32.mrb[6].mxu0 }
 0x16e   : > { %v2442_v31 = vpop.f32.mrb[7].mxu1  ;;  %v2444_v32 = vpop.f32.mrb[7].mxu0 }
 0x173   : > { %v2446_v33 = vpop.f32.mrb[8].mxu1  ;;  %v2448_v34 = vpop.f32.mrb[8].mxu0 }
 0x174   : > { %v2450_v35 = vpop.f32.mrb[9].mxu1  ;;  %v2452_v36 = vpop.f32.mrb[9].mxu0 }
 0x175   : > { %v2454_v37 = vpop.f32.mrb[10].mxu1  ;;  %v2456_v38 = vpop.f32.mrb[10].mxu0 }
 0x176   : > { %v2458_v39 = vpop.f32.mrb[11].mxu1  ;;  %v2460_v40 = vpop.f32.mrb[11].mxu0 }
 0x17b   : > { %v2462_v41 = vpop.f32.mrb[12].mxu1  ;;  %v2464_v42 = vpop.f32.mrb[12].mxu0 }
 0x17c   : > { %v2466_v43 = vpop.f32.mrb[13].mxu1  ;;  %v2468_v44 = vpop.f32.mrb[13].mxu0 }
 0x17d   : > { %v2470_v45 = vpop.f32.mrb[14].mxu1  ;;  %v2472_v46 = vpop.f32.mrb[14].mxu0 }
 0x17e   : > { %v2474_v47 = vpop.f32.mrb[15].mxu1  ;;  %v2476_v48 = vpop.f32.mrb[15].mxu0 }
 0x183   : > { %v2478_v49 = vpop.f32.mrb[16].mxu1  ;;  %v2480_v50 = vpop.f32.mrb[16].mxu0 }
 0x184   : > { %v2482_v51 = vpop.f32.mrb[17].mxu1  ;;  %v2484_v52 = vpop.f32.mrb[17].mxu0 }
 0x185   : > { %2741 = vst [vmem:[#allocation12_spill] sm:$0xff] %v2482_v51  ;;  %v2486_v53 = vpop.f32.mrb[18].mxu1  ;;  %v2488_v54 = vpop.f32.mrb[18].mxu0 }
 0x186   : > { %2742 = vst [vmem:[#allocation13_spill] sm:$0xff] %v2486_v53  ;;  %v2490_v55 = vpop.f32.mrb[19].mxu1  ;;  %v2492_v56 = vpop.f32.mrb[19].mxu0 }
 0x187   : > { %2743 = vst [vmem:[#allocation14_spill] sm:$0xff] %v2490_v55 }
 0x18b   : > { %v2494_v57 = vpop.f32.mrb[20].mxu1  ;;  %v2496_v58 = vpop.f32.mrb[20].mxu0 }
 0x18c   : > { %2744 = vst [vmem:[#allocation15_spill] sm:$0xff] %v2494_v57  ;;  %v2498_v59 = vpop.f32.mrb[21].mxu1  ;;  %v2500_v60 = vpop.f32.mrb[21].mxu0 }
 0x18d   : > { %2745 = vst [vmem:[#allocation16_spill] sm:$0xff] %v2498_v59  ;;  %v2502_v61 = vpop.f32.mrb[22].mxu1  ;;  %v2504_v62 = vpop.f32.mrb[22].mxu0 }
 0x18e   : > { %2746 = vst [vmem:[#allocation17_spill] sm:$0xff] %v2502_v61  ;;  %v2506_v63 = vpop.f32.mrb[23].mxu1  ;;  %v2508_v1 = vpop.f32.mrb[23].mxu0 }
 0x18f   : > { %2747 = vst [vmem:[#allocation18_spill] sm:$0xff] %v2506_v63 }
 0x193   : > { %v2510_v2 = vpop.f32.mrb[24].mxu1  ;;  %v2512_v3 = vpop.f32.mrb[24].mxu0 }
 0x194   : > { %2748 = vst [vmem:[#allocation19_spill] sm:$0xff] %v2510_v2  ;;  %v2514_v4 = vpop.f32.mrb[25].mxu1  ;;  %v2516_v5 = vpop.f32.mrb[25].mxu0 }
 0x195   : > { %2749 = vst [vmem:[#allocation20_spill] sm:$0xff] %v2514_v4  ;;  %v2518_v6 = vpop.f32.mrb[26].mxu1  ;;  %v2520_v7 = vpop.f32.mrb[26].mxu0 }
 0x196   : > { %2750 = vst [vmem:[#allocation21_spill] sm:$0xff] %v2518_v6  ;;  %v2522_v8 = vpop.f32.mrb[27].mxu1  ;;  %v2524_v9 = vpop.f32.mrb[27].mxu0 }
 0x197   : > { %2751 = vst [vmem:[#allocation22_spill] sm:$0xff] %v2522_v8 }
 0x19b   : > { %v2526_v10 = vpop.f32.mrb[28].mxu1  ;;  %v2528_v11 = vpop.f32.mrb[28].mxu0 }
 0x19c   : > { %2752 = vst [vmem:[#allocation23_spill] sm:$0xff] %v2526_v10  ;;  %v2530_v12 = vpop.f32.mrb[29].mxu1  ;;  %v2532_v13 = vpop.f32.mrb[29].mxu0 }
 0x19d   : > { %2753 = vst [vmem:[#allocation24_spill] sm:$0xff] %v2530_v12  ;;  %v2534_v14 = vpop.f32.mrb[30].mxu1  ;;  %v2536_v15 = vpop.f32.mrb[30].mxu0 }
 0x19e   : > { %2754 = vst [vmem:[#allocation25_spill] sm:$0xff] %v2534_v14  ;;  %v2538_v16 = vpop.f32.mrb[31].mxu1  ;;  %v2540_v17 = vpop.f32.mrb[31].mxu0 }
 0x19f   : > { %2755 = vst [vmem:[#allocation26_spill] sm:$0xff] %v2538_v16 }
 0x1a3   : > { %v768_v6 = vpop.f32.mrb[32].mxu1 }
 0x1a4   : > { %v927_v8 = vmul.f32 %v768_v6, %v2416_v19  ;;  %v770_v4 = vpop.f32.mrb[33].mxu1 }
 0x1a5   : > { %v928_v10 = vmul.f32 %v770_v4, %v2420_v21  ;;  %v772_v2 = vpop.f32.mrb[34].mxu1 }
 0x1a6   : > { %v929_v63 = vmul.f32 %v772_v2, %v2424_v23  ;;  %v774_v12 = vpop.f32.mrb[35].mxu1 }
 0x1a7   : > { %v930_v61 = vmul.f32 %v774_v12, %v2428_v25 }
 0x1a8   : > { %v991_v59 = vpack.c.bf16 %v929_v63, %v927_v8 }
 0x1a9   : > { %v992_v14 = vpack.c.bf16 %v930_v61, %v928_v10 }
 0x1ab   : > { %v778_v57 = vpop.f32.mrb[36].mxu1  ;;  %1247 = vmatprep.mubr.bf16.mxu0 %v992_v14 }
 0x1ac   : > { %v931_v16 = vmul.f32 %v778_v57, %v2432_v0  ;;  %v780_v55 = vpop.f32.mrb[37].mxu1  ;;  %1248 = vmatmul.mubr.bf16.vlgmr.msra.gmra.mrb[32].mxu0 %v991_v59 }
 0x1ad   : > { %v932_v53 = vmul.f32 %v780_v55, %v2436_v28  ;;  %v782_v19 = vpop.f32.mrb[38].mxu1 }
 0x1ae   : > { %v933_v6 = vmul.f32 %v782_v19, %v2440_v30  ;;  %v784_v21 = vpop.f32.mrb[39].mxu1 }
 0x1af   : > { %v934_v4 = vmul.f32 %v784_v21, %v2444_v32 }
 0x1b0   : > { %v993_v23 = vpack.c.bf16 %v933_v6, %v931_v16 }
 0x1b1   : > { %v994_v2 = vpack.c.bf16 %v934_v4, %v932_v53 }
 0x1b3   : > { %v788_v51 = vpop.f32.mrb[40].mxu1  ;;  %1257 = vmatprep.mubr.bf16.mxu0 %v994_v2 }
 0x1b4   : > { %v935_v25 = vmul.f32 %v788_v51, %v2448_v34  ;;  %v790_v61 = vpop.f32.mrb[41].mxu1  ;;  %1258 = vmatmul.mubr.bf16.gmra.mrb[36].mxu0 %v993_v23 }
 0x1b5   : > { %v936_v0 = vmul.f32 %v790_v61, %v2452_v36  ;;  %v792_v57 = vpop.f32.mrb[42].mxu1 }
 0x1b6   : > { %v937_v59 = vmul.f32 %v792_v57, %v2456_v38  ;;  %v794_v28 = vpop.f32.mrb[43].mxu1 }
 0x1b7   : > { %v938_v55 = vmul.f32 %v794_v28, %v2460_v40 }
 0x1b8   : > { %v995_v30 = vpack.c.bf16 %v937_v59, %v935_v25 }
 0x1b9   : > { %v996_v63 = vpack.c.bf16 %v938_v55, %v936_v0 }
 0x1bb   : > { %v798_v8 = vpop.f32.mrb[44].mxu1  ;;  %1267 = vmatprep.mubr.bf16.mxu0 %v996_v63 }
 0x1bc   : > { %v939_v32 = vmul.f32 %v798_v8, %v2464_v42  ;;  %v800_v53 = vpop.f32.mrb[45].mxu1  ;;  %1268 = vmatmul.mubr.bf16.gmra.mrb[40].mxu0 %v995_v30 }
 0x1bd   : > { %v940_v34 = vmul.f32 %v800_v53, %v2468_v44  ;;  %v802_v51 = vpop.f32.mrb[46].mxu1 }
 0x1be   : > { %v941_v10 = vmul.f32 %v802_v51, %v2472_v46  ;;  %v804_v36 = vpop.f32.mrb[47].mxu1 }
 0x1bf   : > { %v942_v12 = vmul.f32 %v804_v36, %v2476_v48 }
 0x1c0   : > { %v997_v38 = vpack.c.bf16 %v941_v10, %v939_v32 }
 0x1c1   : > { %v998_v14 = vpack.c.bf16 %v942_v12, %v940_v34 }
 0x1c3   : > { %v808_v16 = vpop.f32.mrb[48].mxu1  ;;  %1277 = vmatprep.mubr.bf16.mxu0 %v998_v14 }
 0x1c4   : > { %v943_v40 = vmul.f32 %v808_v16, %v2480_v50  ;;  %v810_v19 = vpop.f32.mrb[49].mxu1  ;;  %1278 = vmatmul.mubr.bf16.gmra.mrb[44].mxu0 %v997_v38 }
 0x1c5   : > { %v944_v42 = vmul.f32 %v810_v19, %v2484_v52  ;;  %v812_v6 = vpop.f32.mrb[50].mxu1 }
 0x1c6   : > { %v945_v21 = vmul.f32 %v812_v6, %v2488_v54  ;;  %v814_v44 = vpop.f32.mrb[51].mxu1 }
 0x1c7   : > { %v946_v4 = vmul.f32 %v814_v44, %v2492_v56 }
 0x1c8   : > { %v999_v46 = vpack.c.bf16 %v945_v21, %v943_v40 }
 0x1c9   : > { %v1000_v23 = vpack.c.bf16 %v946_v4, %v944_v42 }
 0x1cb   : > { %v818_v2 = vpop.f32.mrb[52].mxu1  ;;  %1287 = vmatprep.mubr.bf16.mxu0 %v1000_v23 }
 0x1cc   : > { %v947_v48 = vmul.f32 %v818_v2, %v2496_v58  ;;  %v820_v25 = vpop.f32.mrb[53].mxu1  ;;  %1288 = vmatmul.mubr.bf16.gmra.mrb[48].mxu0 %v999_v46 }
 0x1cd   : > { %v948_v50 = vmul.f32 %v820_v25, %v2500_v60  ;;  %v822_v61 = vpop.f32.mrb[54].mxu1 }
 0x1ce   : > { %v949_v0 = vmul.f32 %v822_v61, %v2504_v62  ;;  %v824_v52 = vpop.f32.mrb[55].mxu1 }
 0x1cf   : > { %v950_v57 = vmul.f32 %v824_v52, %v2508_v1 }
 0x1d0   : > { %v1001_v54 = vpack.c.bf16 %v949_v0, %v947_v48 }
 0x1d1   : > { %v1002_v59 = vpack.c.bf16 %v950_v57, %v948_v50 }
 0x1d3   : > { %v828_v28 = vpop.f32.mrb[56].mxu1  ;;  %1297 = vmatprep.mubr.bf16.mxu0 %v1002_v59 }
 0x1d4   : > { %v951_v56 = vmul.f32 %v828_v28, %v2512_v3  ;;  %v830_v55 = vpop.f32.mrb[57].mxu1  ;;  %1298 = vmatmul.mubr.bf16.gmra.mrb[52].mxu0 %v1001_v54 }
 0x1d5   : > { %v952_v58 = vmul.f32 %v830_v55, %v2516_v5  ;;  %v832_v30 = vpop.f32.mrb[58].mxu1 }
 0x1d6   : > { %v953_v63 = vmul.f32 %v832_v30, %v2520_v7  ;;  %v834_v60 = vpop.f32.mrb[59].mxu1  ;;  %v2756_v30 = vld [vmem:[#allocation12_spill] sm:$0xff] }
 0x1d7   : > { %v954_v8 = vmul.f32 %v834_v60, %v2524_v9  ;;  %v2757_v60 = vld [vmem:[#allocation13_spill] sm:$0xff] }
 0x1d8   : > { %v1003_v62 = vpack.c.bf16 %v953_v63, %v951_v56 }
 0x1d9   : > { %v1004_v32 = vpack.c.bf16 %v954_v8, %v952_v58 }
 0x1db   : > { %v838_v53 = vpop.f32.mrb[60].mxu1  ;;  %1307 = vmatprep.mubr.bf16.mxu0 %v1004_v32 }
 0x1dc   : > { %v955_v1 = vmul.f32 %v838_v53, %v2528_v11  ;;  %v840_v34 = vpop.f32.mrb[61].mxu1  ;;  %1308 = vmatmul.mubr.bf16.gmra.mrb[56].mxu0 %v1003_v62  ;;  %v2758_v62 = vld [vmem:[#allocation14_spill] sm:$0xff] }
 0x1dd   : > { %v956_v3 = vmul.f32 %v840_v34, %v2532_v13  ;;  %v842_v51 = vpop.f32.mrb[62].mxu1 }
 0x1de   : > { %v957_v10 = vmul.f32 %v842_v51, %v2536_v15  ;;  %v844_v5 = vpop.f32.mrb[63].mxu1  ;;  %v2760_v51 = vld [vmem:[#allocation16_spill] sm:$0xff] }
 0x1df   : > { %v958_v36 = vmul.f32 %v844_v5, %v2540_v17  ;;  %v2761_v5 = vld [vmem:[#allocation17_spill] sm:$0xff] }
 0x1e0   : > { %v1005_v7 = vpack.c.bf16 %v957_v10, %v955_v1 }
 0x1e1   : > { %v1006_v12 = vpack.c.bf16 %v958_v36, %v956_v3 }
 0x1e3   : > { %v848_v38 = vpop.f32.mrb[64].mxu1  ;;  %1317 = vmatprep.mubr.bf16.mxu0 %v1006_v12  ;;  %v2762_v12 = vld [vmem:[#allocation18_spill] sm:$0xff] }
 0x1e4   : > { %v959_v9 = vmul.f32 %v848_v38, %v2414_v18  ;;  %v850_v14 = vpop.f32.mrb[65].mxu1  ;;  %1318 = vmatmul.mubr.bf16.gmra.mrb[60].mxu0 %v1005_v7 }
 0x1e5   : > { %v960_v11 = vmul.f32 %v850_v14, %v2418_v20  ;;  %v852_v16 = vpop.f32.mrb[66].mxu1 }
 0x1e6   : > { %v961_v40 = vmul.f32 %v852_v16, %v2422_v22  ;;  %v854_v13 = vpop.f32.mrb[67].mxu1  ;;  %v2763_v16 = vld [vmem:[#allocation19_spill] sm:$0xff] }
 0x1e7   : > { %v962_v19 = vmul.f32 %v854_v13, %v2426_v24 }
 0x1e8   : > { %v1007_v15 = vpack.c.bf16 %v961_v40, %v959_v9 }
 0x1e9   : > { %v1008_v42 = vpack.c.bf16 %v962_v19, %v960_v11  ;;  %v2764_v19 = vld [vmem:[#allocation20_spill] sm:$0xff] }
 0x1eb   : > { %v858_v6 = vpop.f32.mrb[68].mxu1  ;;  %1327 = vmatprep.mubr.bf16.mxu0 %v1008_v42 }
 0x1ec   : > { %v963_v17 = vmul.f32 %v858_v6, %v2430_v26  ;;  %v860_v21 = vpop.f32.mrb[69].mxu1  ;;  %1328 = vmatmul.mubr.bf16.gmra.mrb[64].mxu0 %v1007_v15  ;;  %v2765_v6 = vld [vmem:[#allocation21_spill] sm:$0xff] }
 0x1ed   : > { %v964_v18 = vmul.f32 %v860_v21, %v2434_v27  ;;  %v862_v44 = vpop.f32.mrb[70].mxu1 }
 0x1ee   : > { %v965_v4 = vmul.f32 %v862_v44, %v2438_v29  ;;  %v864_v20 = vpop.f32.mrb[71].mxu1 }
 0x1ef   : > { %v966_v46 = vmul.f32 %v864_v20, %v2442_v31 }
 0x1f0   : > { %v1009_v22 = vpack.c.bf16 %v965_v4, %v963_v17 }
 0x1f1   : > { %v1010_v23 = vpack.c.bf16 %v966_v46, %v964_v18  ;;  %v2766_v18 = vld [vmem:[#allocation22_spill] sm:$0xff] }
 0x1f3   : > { %v868_v2 = vpop.f32.mrb[72].mxu1  ;;  %1337 = vmatprep.mubr.bf16.mxu0 %v1010_v23 }
 0x1f4   : > { %v967_v24 = vmul.f32 %v868_v2, %v2446_v33  ;;  %v870_v48 = vpop.f32.mrb[73].mxu1  ;;  %1338 = vmatmul.mubr.bf16.gmra.mrb[68].mxu0 %v1009_v22  ;;  %v2767_v22 = vld [vmem:[#allocation23_spill] sm:$0xff] }
 0x1f5   : > { %v968_v26 = vmul.f32 %v870_v48, %v2450_v35  ;;  %v872_v25 = vpop.f32.mrb[74].mxu1 }
 0x1f6   : > { %v969_v50 = vmul.f32 %v872_v25, %v2454_v37  ;;  %v874_v27 = vpop.f32.mrb[75].mxu1  ;;  %v2769_v25 = vld [vmem:[#allocation25_spill] sm:$0xff] }
 0x1f7   : > { %v970_v61 = vmul.f32 %v874_v27, %v2458_v39 }
 0x1f8   : > { %v1011_v29 = vpack.c.bf16 %v969_v50, %v967_v24  ;;  %v2768_v24 = vld [vmem:[#allocation24_spill] sm:$0xff] }
 0x1f9   : > { %v1012_v0 = vpack.c.bf16 %v970_v61, %v968_v26  ;;  %v2770_v61 = vld [vmem:[#allocation26_spill] sm:$0xff] }
 0x1fb   : > { %v878_v52 = vpop.f32.mrb[76].mxu1  ;;  %1347 = vmatprep.mubr.bf16.mxu0 %v1012_v0 }
 0x1fc   : > { %v971_v31 = vmul.f32 %v878_v52, %v2462_v41  ;;  %v880_v57 = vpop.f32.mrb[77].mxu1  ;;  %1348 = vmatmul.mubr.bf16.gmra.mrb[72].mxu0 %v1011_v29 }
 0x1fd   : > { %v972_v33 = vmul.f32 %v880_v57, %v2466_v43  ;;  %v882_v54 = vpop.f32.mrb[78].mxu1 }
 0x1fe   : > { %v973_v59 = vmul.f32 %v882_v54, %v2470_v45  ;;  %v884_v35 = vpop.f32.mrb[79].mxu1 }
 0x1ff   : > { %v974_v28 = vmul.f32 %v884_v35, %v2474_v47  ;;  %v2759_v47 = vld [vmem:[#allocation15_spill] sm:$0xff] }
 0x200   : > { %v1013_v37 = vpack.c.bf16 %v973_v59, %v971_v31 }
 0x201   : > { %v1014_v56 = vpack.c.bf16 %v974_v28, %v972_v33 }
 0x203   : > { %v888_v55 = vpop.f32.mrb[80].mxu1  ;;  %1357 = vmatprep.mubr.bf16.mxu0 %v1014_v56 }
 0x204   : > { %v975_v39 = vmul.f32 %v888_v55, %v2478_v49  ;;  %v890_v58 = vpop.f32.mrb[81].mxu1  ;;  %1358 = vmatmul.mubr.bf16.gmra.mrb[76].mxu0 %v1013_v37 }
 0x205   : > { %v976_v41 = vmul.f32 %v890_v58, %v2756_v30  ;;  %v892_v63 = vpop.f32.mrb[82].mxu1 }
 0x206   : > { %v977_v8 = vmul.f32 %v892_v63, %v2757_v60  ;;  %v894_v43 = vpop.f32.mrb[83].mxu1 }
 0x207   : > { %v978_v32 = vmul.f32 %v894_v43, %v2758_v62 }
 0x208   : > { %v1015_v45 = vpack.c.bf16 %v977_v8, %v975_v39 }
 0x209   : > { %v1016_v53 = vpack.c.bf16 %v978_v32, %v976_v41 }
 0x20b   : > { %v898_v1 = vpop.f32.mrb[84].mxu1  ;;  %1367 = vmatprep.mubr.bf16.mxu0 %v1016_v53 }
 0x20c   : > { %v979_v34 = vmul.f32 %v898_v1, %v2759_v47  ;;  %v900_v3 = vpop.f32.mrb[85].mxu1  ;;  %1368 = vmatmul.mubr.bf16.gmra.mrb[80].mxu0 %v1015_v45 }
 0x20d   : > { %v980_v49 = vmul.f32 %v900_v3, %v2760_v51  ;;  %v902_v10 = vpop.f32.mrb[86].mxu1 }
 0x20e   : > { %v981_v36 = vmul.f32 %v902_v10, %v2761_v5  ;;  %v904_v7 = vpop.f32.mrb[87].mxu1 }
 0x20f   : > { %v982_v38 = vmul.f32 %v904_v7, %v2762_v12 }
 0x210   : > { %v1017_v9 = vpack.c.bf16 %v981_v36, %v979_v34 }
 0x211   : > { %v1018_v14 = vpack.c.bf16 %v982_v38, %v980_v49 }
 0x213   : > { %v908_v11 = vpop.f32.mrb[88].mxu1  ;;  %1377 = vmatprep.mubr.bf16.mxu0 %v1018_v14 }
 0x214   : > { %v983_v40 = vmul.f32 %v908_v11, %v2763_v16  ;;  %v910_v13 = vpop.f32.mrb[89].mxu1  ;;  %1378 = vmatmul.mubr.bf16.gmra.mrb[84].mxu0 %v1017_v9 }
 0x215   : > { %v984_v15 = vmul.f32 %v910_v13, %v2764_v19  ;;  %v912_v42 = vpop.f32.mrb[90].mxu1 }
 0x216   : > { %v985_v17 = vmul.f32 %v912_v42, %v2765_v6  ;;  %v914_v21 = vpop.f32.mrb[91].mxu1 }
 0x217   : > { %v986_v44 = vmul.f32 %v914_v21, %v2766_v18 }
 0x218   : > { %v1019_v4 = vpack.c.bf16 %v985_v17, %v983_v40 }
 0x219   : > { %v1020_v20 = vpack.c.bf16 %v986_v44, %v984_v15 }
 0x21b   : > { %v918_v46 = vpop.f32.mrb[92].mxu1  ;;  %1387 = vmatprep.mubr.bf16.mxu0 %v1020_v20 }
 0x21c   : > { %v987_v23 = vmul.f32 %v918_v46, %v2767_v22  ;;  %v920_v2 = vpop.f32.mrb[93].mxu1  ;;  %1388 = vmatmul.mubr.bf16.gmra.mrb[88].mxu0 %v1019_v4 }
 0x21d   : > { %v988_v48 = vmul.f32 %v920_v2, %v2768_v24  ;;  %v922_v26 = vpop.f32.mrb[94].mxu1 }
 0x21e   : > { %v989_v50 = vmul.f32 %v922_v26, %v2769_v25  ;;  %v924_v27 = vpop.f32.mrb[95].mxu1 }
 0x21f   : > { %v990_v29 = vmul.f32 %v924_v27, %v2770_v61 }
 0x220   : > { %v1021_v0 = vpack.c.bf16 %v989_v50, %v987_v23 }
 0x221   : > { %v1022_v52 = vpack.c.bf16 %v990_v29, %v988_v48 }
 0x223   : > { %1397 = vmatprep.mubr.bf16.mxu0 %v1022_v52 }
 0x224   : > { %1398 = vmatmul.mubr.bf16.gmra.mrb[92].mxu0 %v1021_v0 }
 0x27f   : > { %v1249_v31 = vpop.f32.mrb[32].mxu0 }
 0x280   : > { %v1408_v57 = vmul.f32 0.0625, %v1249_v31  ;;  %v1251_v33 = vpop.f32.mrb[33].mxu0 }
 0x281   : > { %v1409_v54 = vmul.f32 0.0625, %v1251_v33  ;;  %v1253_v59 = vpop.f32.mrb[34].mxu0 }
 0x282   : > { %1472 = vst [vmem:[%s2607_s20] sm:$0xff] %v1408_v57  ;;  %v1410_v35 = vmul.f32 0.0625, %v1253_v59  ;;  %v1255_v28 = vpop.f32.mrb[35].mxu0 }
 0x283   : > { %1473 = vst [vmem:[%s2607_s20 + $0x8] sm:$0xff] %v1409_v54  ;;  %v1411_v37 = vmul.f32 0.0625, %v1255_v28 }
 0x284   : > { %1474 = vst [vmem:[%s2607_s20 + $0x10] sm:$0xff] %v1410_v35 }
 0x285   : > { %1475 = vst [vmem:[%s2607_s20 + $0x18] sm:$0xff] %v1411_v37 }
 0x287   : > { %v1259_v56 = vpop.f32.mrb[36].mxu0 }
 0x288   : > { %v1412_v55 = vmul.f32 0.0625, %v1259_v56  ;;  %v1261_v39 = vpop.f32.mrb[37].mxu0 }
 0x289   : > { %v1413_v58 = vmul.f32 0.0625, %v1261_v39  ;;  %v1263_v30 = vpop.f32.mrb[38].mxu0 }
 0x28a   : > { %1476 = vst [vmem:[%s2607_s20 + $0x20] sm:$0xff] %v1412_v55  ;;  %v1414_v41 = vmul.f32 0.0625, %v1263_v30  ;;  %v1265_v63 = vpop.f32.mrb[39].mxu0 }
 0x28b   : > { %1477 = vst [vmem:[%s2607_s20 + $0x28] sm:$0xff] %v1413_v58  ;;  %v1415_v60 = vmul.f32 0.0625, %v1265_v63 }
 0x28c   : > { %1478 = vst [vmem:[%s2607_s20 + $0x30] sm:$0xff] %v1414_v41 }
 0x28d   : > { %1479 = vst [vmem:[%s2607_s20 + $0x38] sm:$0xff] %v1415_v60 }
 0x28f   : > { %v1269_v8 = vpop.f32.mrb[40].mxu0 }
 0x290   : > { %v1416_v43 = vmul.f32 0.0625, %v1269_v8  ;;  %v1271_v62 = vpop.f32.mrb[41].mxu0 }
 0x291   : > { %v1417_v32 = vmul.f32 0.0625, %v1271_v62  ;;  %v1273_v45 = vpop.f32.mrb[42].mxu0 }
 0x292   : > { %1480 = vst [vmem:[%s2607_s20 + $0x40] sm:$0xff] %v1416_v43  ;;  %v1418_v53 = vmul.f32 0.0625, %v1273_v45  ;;  %v1275_v1 = vpop.f32.mrb[43].mxu0 }
 0x293   : > { %1481 = vst [vmem:[%s2607_s20 + $0x48] sm:$0xff] %v1417_v32  ;;  %v1419_v47 = vmul.f32 0.0625, %v1275_v1 }
 0x294   : > { %1482 = vst [vmem:[%s2607_s20 + $0x50] sm:$0xff] %v1418_v53 }
 0x295   : > { %1483 = vst [vmem:[%s2607_s20 + $0x58] sm:$0xff] %v1419_v47 }
 0x297   : > { %v1279_v34 = vpop.f32.mrb[44].mxu0 }
 0x298   : > { %v1420_v3 = vmul.f32 0.0625, %v1279_v34  ;;  %v1281_v51 = vpop.f32.mrb[45].mxu0 }
 0x299   : > { %v1421_v49 = vmul.f32 0.0625, %v1281_v51  ;;  %v1283_v10 = vpop.f32.mrb[46].mxu0 }
 0x29a   : > { %1484 = vst [vmem:[%s2607_s20 + $0x60] sm:$0xff] %v1420_v3  ;;  %v1422_v5 = vmul.f32 0.0625, %v1283_v10  ;;  %v1285_v36 = vpop.f32.mrb[47].mxu0 }
 0x29b   : > { %1485 = vst [vmem:[%s2607_s20 + $0x68] sm:$0xff] %v1421_v49  ;;  %v1423_v7 = vmul.f32 0.0625, %v1285_v36 }
 0x29c   : > { %1486 = vst [vmem:[%s2607_s20 + $0x70] sm:$0xff] %v1422_v5 }
 0x29d   : > { %1487 = vst [vmem:[%s2607_s20 + $0x78] sm:$0xff] %v1423_v7 }
 0x29f   : > { %v1289_v12 = vpop.f32.mrb[48].mxu0 }
 0x2a0   : > { %v1424_v38 = vmul.f32 0.0625, %v1289_v12  ;;  %v1291_v9 = vpop.f32.mrb[49].mxu0 }
 0x2a1   : > { %v1425_v14 = vmul.f32 0.0625, %v1291_v9  ;;  %v1293_v11 = vpop.f32.mrb[50].mxu0 }
 0x2a2   : > { %1488 = vst [vmem:[%s2607_s20 + $0x80] sm:$0xff] %v1424_v38  ;;  %v1426_v16 = vmul.f32 0.0625, %v1293_v11  ;;  %v1295_v40 = vpop.f32.mrb[51].mxu0 }
 0x2a3   : > { %1489 = vst [vmem:[%s2607_s20 + $0x88] sm:$0xff] %v1425_v14  ;;  %v1427_v13 = vmul.f32 0.0625, %v1295_v40 }
 0x2a4   : > { %1490 = vst [vmem:[%s2607_s20 + $0x90] sm:$0xff] %v1426_v16 }
 0x2a5   : > { %1491 = vst [vmem:[%s2607_s20 + $0x98] sm:$0xff] %v1427_v13 }
 0x2a7   : > { %v1299_v19 = vpop.f32.mrb[52].mxu0 }
 0x2a8   : > { %v1428_v15 = vmul.f32 0.0625, %v1299_v19  ;;  %v1301_v42 = vpop.f32.mrb[53].mxu0 }
 0x2a9   : > { %v1429_v6 = vmul.f32 0.0625, %v1301_v42  ;;  %v1303_v17 = vpop.f32.mrb[54].mxu0 }
 0x2aa   : > { %1492 = vst [vmem:[%s2607_s20 + $0xa0] sm:$0xff] %v1428_v15  ;;  %v1430_v21 = vmul.f32 0.0625, %v1303_v17  ;;  %v1305_v18 = vpop.f32.mrb[55].mxu0 }
 0x2ab   : > { %1493 = vst [vmem:[%s2607_s20 + $0xa8] sm:$0xff] %v1429_v6  ;;  %v1431_v44 = vmul.f32 0.0625, %v1305_v18 }
 0x2ac   : > { %1494 = vst [vmem:[%s2607_s20 + $0xb0] sm:$0xff] %v1430_v21 }
 0x2ad   : > { %1495 = vst [vmem:[%s2607_s20 + $0xb8] sm:$0xff] %v1431_v44 }
 0x2af   : > { %v1309_v4 = vpop.f32.mrb[56].mxu0 }
 0x2b0   : > { %v1432_v20 = vmul.f32 0.0625, %v1309_v4  ;;  %v1311_v46 = vpop.f32.mrb[57].mxu0 }
 0x2b1   : > { %v1433_v22 = vmul.f32 0.0625, %v1311_v46  ;;  %v1313_v23 = vpop.f32.mrb[58].mxu0 }
 0x2b2   : > { %1496 = vst [vmem:[%s2607_s20 + $0xc0] sm:$0xff] %v1432_v20  ;;  %v1434_v2 = vmul.f32 0.0625, %v1313_v23  ;;  %v1315_v24 = vpop.f32.mrb[59].mxu0 }
 0x2b3   : > { %1497 = vst [vmem:[%s2607_s20 + $0xc8] sm:$0xff] %v1433_v22  ;;  %v1435_v48 = vmul.f32 0.0625, %v1315_v24 }
 0x2b4   : > { %1498 = vst [vmem:[%s2607_s20 + $0xd0] sm:$0xff] %v1434_v2 }
 0x2b5   : > { %1499 = vst [vmem:[%s2607_s20 + $0xd8] sm:$0xff] %v1435_v48 }
 0x2b7   : > { %v1319_v26 = vpop.f32.mrb[60].mxu0 }
 0x2b8   : > { %v1436_v25 = vmul.f32 0.0625, %v1319_v26  ;;  %v1321_v50 = vpop.f32.mrb[61].mxu0 }
 0x2b9   : > { %v1437_v27 = vmul.f32 0.0625, %v1321_v50  ;;  %v1323_v61 = vpop.f32.mrb[62].mxu0 }
 0x2ba   : > { %1500 = vst [vmem:[%s2607_s20 + $0xe0] sm:$0xff] %v1436_v25  ;;  %v1438_v29 = vmul.f32 0.0625, %v1323_v61  ;;  %v1325_v0 = vpop.f32.mrb[63].mxu0 }
 0x2bb   : > { %1501 = vst [vmem:[%s2607_s20 + $0xe8] sm:$0xff] %v1437_v27  ;;  %v1439_v52 = vmul.f32 0.0625, %v1325_v0 }
 0x2bc   : > { %1502 = vst [vmem:[%s2607_s20 + $0xf0] sm:$0xff] %v1438_v29 }
 0x2bd   : > { %1503 = vst [vmem:[%s2607_s20 + $0xf8] sm:$0xff] %v1439_v52 }
 0x2bf   : > { %v1329_v31 = vpop.f32.mrb[64].mxu0 }
 0x2c0   : > { %v1440_v57 = vmul.f32 0.0625, %v1329_v31  ;;  %v1331_v33 = vpop.f32.mrb[65].mxu0 }
 0x2c1   : > { %v1441_v54 = vmul.f32 0.0625, %v1331_v33  ;;  %v1333_v59 = vpop.f32.mrb[66].mxu0 }
 0x2c2   : > { %1504 = vst [vmem:[%s2607_s20 + $0x100] sm:$0xff] %v1440_v57  ;;  %v1442_v35 = vmul.f32 0.0625, %v1333_v59  ;;  %v1335_v28 = vpop.f32.mrb[67].mxu0 }
 0x2c3   : > { %1505 = vst [vmem:[%s2607_s20 + $0x108] sm:$0xff] %v1441_v54  ;;  %v1443_v37 = vmul.f32 0.0625, %v1335_v28 }
 0x2c4   : > { %1506 = vst [vmem:[%s2607_s20 + $0x110] sm:$0xff] %v1442_v35 }
 0x2c5   : > { %1507 = vst [vmem:[%s2607_s20 + $0x118] sm:$0xff] %v1443_v37 }
 0x2c7   : > { %v1339_v56 = vpop.f32.mrb[68].mxu0 }
 0x2c8   : > { %v1444_v55 = vmul.f32 0.0625, %v1339_v56  ;;  %v1341_v39 = vpop.f32.mrb[69].mxu0 }
 0x2c9   : > { %v1445_v58 = vmul.f32 0.0625, %v1341_v39  ;;  %v1343_v30 = vpop.f32.mrb[70].mxu0 }
 0x2ca   : > { %1508 = vst [vmem:[%s2607_s20 + $0x120] sm:$0xff] %v1444_v55  ;;  %v1446_v41 = vmul.f32 0.0625, %v1343_v30  ;;  %v1345_v63 = vpop.f32.mrb[71].mxu0 }
 0x2cb   : > { %1509 = vst [vmem:[%s2607_s20 + $0x128] sm:$0xff] %v1445_v58  ;;  %v1447_v60 = vmul.f32 0.0625, %v1345_v63 }
 0x2cc   : > { %1510 = vst [vmem:[%s2607_s20 + $0x130] sm:$0xff] %v1446_v41 }
 0x2cd   : > { %1511 = vst [vmem:[%s2607_s20 + $0x138] sm:$0xff] %v1447_v60 }
 0x2cf   : > { %v1349_v8 = vpop.f32.mrb[72].mxu0 }
 0x2d0   : > { %v1448_v43 = vmul.f32 0.0625, %v1349_v8  ;;  %v1351_v62 = vpop.f32.mrb[73].mxu0 }
 0x2d1   : > { %v1449_v32 = vmul.f32 0.0625, %v1351_v62  ;;  %v1353_v45 = vpop.f32.mrb[74].mxu0 }
 0x2d2   : > { %1512 = vst [vmem:[%s2607_s20 + $0x140] sm:$0xff] %v1448_v43  ;;  %v1450_v53 = vmul.f32 0.0625, %v1353_v45  ;;  %v1355_v1 = vpop.f32.mrb[75].mxu0 }
 0x2d3   : > { %1513 = vst [vmem:[%s2607_s20 + $0x148] sm:$0xff] %v1449_v32  ;;  %v1451_v47 = vmul.f32 0.0625, %v1355_v1 }
 0x2d4   : > { %1514 = vst [vmem:[%s2607_s20 + $0x150] sm:$0xff] %v1450_v53 }
 0x2d5   : > { %1515 = vst [vmem:[%s2607_s20 + $0x158] sm:$0xff] %v1451_v47 }
 0x2d7   : > { %v1359_v34 = vpop.f32.mrb[76].mxu0 }
 0x2d8   : > { %v1452_v3 = vmul.f32 0.0625, %v1359_v34  ;;  %v1361_v51 = vpop.f32.mrb[77].mxu0 }
 0x2d9   : > { %v1453_v49 = vmul.f32 0.0625, %v1361_v51  ;;  %v1363_v10 = vpop.f32.mrb[78].mxu0 }
 0x2da   : > { %1516 = vst [vmem:[%s2607_s20 + $0x160] sm:$0xff] %v1452_v3  ;;  %v1454_v5 = vmul.f32 0.0625, %v1363_v10  ;;  %v1365_v36 = vpop.f32.mrb[79].mxu0 }
 0x2db   : > { %1517 = vst [vmem:[%s2607_s20 + $0x168] sm:$0xff] %v1453_v49  ;;  %v1455_v7 = vmul.f32 0.0625, %v1365_v36 }
 0x2dc   : > { %1518 = vst [vmem:[%s2607_s20 + $0x170] sm:$0xff] %v1454_v5 }
 0x2dd   : > { %1519 = vst [vmem:[%s2607_s20 + $0x178] sm:$0xff] %v1455_v7 }
 0x2df   : > { %v1369_v12 = vpop.f32.mrb[80].mxu0 }
 0x2e0   : > { %v1456_v38 = vmul.f32 0.0625, %v1369_v12  ;;  %v1371_v9 = vpop.f32.mrb[81].mxu0 }
 0x2e1   : > { %v1457_v14 = vmul.f32 0.0625, %v1371_v9  ;;  %v1373_v11 = vpop.f32.mrb[82].mxu0 }
 0x2e2   : > { %1520 = vst [vmem:[%s2607_s20 + $0x180] sm:$0xff] %v1456_v38  ;;  %v1458_v16 = vmul.f32 0.0625, %v1373_v11  ;;  %v1375_v40 = vpop.f32.mrb[83].mxu0 }
 0x2e3   : > { %1521 = vst [vmem:[%s2607_s20 + $0x188] sm:$0xff] %v1457_v14  ;;  %v1459_v13 = vmul.f32 0.0625, %v1375_v40 }
 0x2e4   : > { %1522 = vst [vmem:[%s2607_s20 + $0x190] sm:$0xff] %v1458_v16 }
 0x2e5   : > { %1523 = vst [vmem:[%s2607_s20 + $0x198] sm:$0xff] %v1459_v13 }
 0x2e7   : > { %v1379_v19 = vpop.f32.mrb[84].mxu0 }
 0x2e8   : > { %v1460_v15 = vmul.f32 0.0625, %v1379_v19  ;;  %v1381_v42 = vpop.f32.mrb[85].mxu0 }
 0x2e9   : > { %v1461_v6 = vmul.f32 0.0625, %v1381_v42  ;;  %v1383_v17 = vpop.f32.mrb[86].mxu0 }
 0x2ea   : > { %1524 = vst [vmem:[%s2607_s20 + $0x1a0] sm:$0xff] %v1460_v15  ;;  %v1462_v21 = vmul.f32 0.0625, %v1383_v17  ;;  %v1385_v18 = vpop.f32.mrb[87].mxu0 }
 0x2eb   : > { %1525 = vst [vmem:[%s2607_s20 + $0x1a8] sm:$0xff] %v1461_v6  ;;  %v1463_v44 = vmul.f32 0.0625, %v1385_v18 }
 0x2ec   : > { %1526 = vst [vmem:[%s2607_s20 + $0x1b0] sm:$0xff] %v1462_v21 }
 0x2ed   : > { %1527 = vst [vmem:[%s2607_s20 + $0x1b8] sm:$0xff] %v1463_v44 }
 0x2ef   : > { %v1389_v4 = vpop.f32.mrb[88].mxu0 }
 0x2f0   : > { %v1464_v20 = vmul.f32 0.0625, %v1389_v4  ;;  %v1391_v46 = vpop.f32.mrb[89].mxu0 }
 0x2f1   : > { %v1465_v22 = vmul.f32 0.0625, %v1391_v46  ;;  %v1393_v23 = vpop.f32.mrb[90].mxu0 }
 0x2f2   : > { %1528 = vst [vmem:[%s2607_s20 + $0x1c0] sm:$0xff] %v1464_v20  ;;  %v1466_v2 = vmul.f32 0.0625, %v1393_v23  ;;  %v1395_v24 = vpop.f32.mrb[91].mxu0 }
 0x2f3   : > { %1529 = vst [vmem:[%s2607_s20 + $0x1c8] sm:$0xff] %v1465_v22  ;;  %v1467_v48 = vmul.f32 0.0625, %v1395_v24 }
 0x2f4   : > { %1530 = vst [vmem:[%s2607_s20 + $0x1d0] sm:$0xff] %v1466_v2 }
 0x2f5   : > { %1531 = vst [vmem:[%s2607_s20 + $0x1d8] sm:$0xff] %v1467_v48 }
 0x2f7   : > { %v1399_v26 = vpop.f32.mrb[92].mxu0 }
 0x2f8   : > { %v1468_v25 = vmul.f32 0.0625, %v1399_v26  ;;  %v1401_v50 = vpop.f32.mrb[93].mxu0 }
 0x2f9   : > { %v1469_v27 = vmul.f32 0.0625, %v1401_v50  ;;  %v1403_v61 = vpop.f32.mrb[94].mxu0 }
 0x2fa   : > { %1532 = vst [vmem:[%s2607_s20 + $0x1e0] sm:$0xff] %v1468_v25  ;;  %v1470_v29 = vmul.f32 0.0625, %v1403_v61  ;;  %v1405_v0 = vpop.f32.mrb[95].mxu0 }
 0x2fb   : > { %1533 = vst [vmem:[%s2607_s20 + $0x1e8] sm:$0xff] %v1469_v27  ;;  %v1471_v52 = vmul.f32 0.0625, %v1405_v0 }
 0x2fc   : > { %1534 = vst [vmem:[%s2607_s20 + $0x1f0] sm:$0xff] %v1470_v29 }
 0x2fd   : > { %1535 = vst [vmem:[%s2607_s20 + $0x1f8] sm:$0xff] %v1471_v52 }
 0x2fe   : > { %2048 = shalt.err (!%p2045_p2)
}
 0x2ff   : > { %s2049_s17 = scalar_lea.hbm %s2675_s7, 8192  ;;  %s2053_s30 = scalar_lea.hbm %s2727_s3, 16384 }
 0x300   : > { %p2050_p13 = scmp.ne.s32.totalorder %s2675_s7, %s2049_s17  ;;  %p2054_p4 = scmp.lt.u32.totalorder %s2675_s7, %s2727_s3 }
 0x301   : > { %p2055_p7 = scmp.lt.u32.totalorder %s2053_s30, %s2049_s17  ;;  %p2057_p11 = scmp.lt.u32.totalorder %s2049_s17, %s2675_s7 }
 0x302   : > { %p2051_p6 = pnand %p2050_p13, %p2771_p0 }
 0x303   : > { %p2056_p8 = por %p2055_p7, %p2054_p4 }
 0x304   : > { %p2052_p10 = pneg %p2051_p6 }
 0x305   : > { %p2058_p1 = por %p2057_p11, %p2056_p8 }
 0x307   : > { %p2059_p3 = pnand %p2058_p1, %p2052_p10 }
 0x309   : > { %2062 = shalt.err (!%p2059_p3)
}
 0x30a   : > { %s2118_s18 = smov 256   ;;  %s2119_s20 = smov 16  }
 0x30b   : > { %1771 = dma.vmem_to_hbm [thread:$0]  (%p2771_p0), %s2677_s27, 8192, %s2675_s7, %s1537_s16, %s2118_s18, %s2118_s18, %s2119_s20  }
 0x30c PF: > { %s1566_s24 = sand.u32 1, %s2093_s12   ;;  %p2772_p5 = scmp.ne.s32.totalorder %s2732_s19, 0 }
 0x30d   : > { %p2773_p9 = scmp.ge.s32.totalorder %s2105_s15, 2  ;;  %s1567_s28 = scalar_lea.sflag [#allocation4], %s1566_s24 }
 0x30f   : > { %p1785_p12 = pnand %p2773_p9, %p2772_p5 }
 0x311   : > { %2088 = dma.done.wait (!%p1785_p12), %s1567_s28, 8192  }
 0x312   : > { %2090 = vsyncadd (!%p1785_p12), %s1567_s28, 4294959104  ;;  %p17_p2 = scmp.ge.s32.totalorder %s2250_s6, 4   ;;  %s2774_s12 = smov %s2097_s13 }
 0x313   : > { %s2775_s13 = smov %s2101_s14  ;;  %s2776_s14 = smov %s2259_s9 }
 0x314   : > { %s2777_s15 = smov %s2250_s6  ;;  %19 = sbr.rel (!%p17_p2) target bundleno = 6 (0x6), region = 85 }
 0x31b   :  { %1572 = vsyncpa [#allocation3], 1 }
 0x31c   :  { %1574 = vsyncpa [#allocation3 + $0x1], 1 }
 0x31d   :  { %1575 = vsyncpa [#allocation6], 1 }
 0x31e   :  { %1576 = vsyncpa [#allocation4], 1 }
 0x31f   :  { %1578 = vsyncpa [#allocation4 + $0x1], 1 }

// kernel: tpu_custom_call.1
= control target key start
LH: loop header
LB: loop body
LE: loop exit
PB: predicated region body
PF: predicated region fallthrough
CT: control target
= control target key end

     0   :  { %8 = vsyncpa [#allocation3], 0  ;;  %s2724_s0 = inlined_call_operand.hbm [shape: bf16[512,128], index: 0, kind: input, shape index: {}]   ;;  %s2725_s1 = inlined_call_operand.hbm [shape: bf16[128,512], index: 1, kind: input, shape index: {}]   ;;  %s2726_s2 = inlined_call_operand.hbm [shape: bf16[1,256,256], index: 2, kind: input, shape index: {}]   ;;  %s2727_s3 = inlined_call_operand.hbm [shape: f32[512,256], index: 3, kind: output, shape index: {}]  }
   0x1   :  { %10 = vsyncpa [#allocation3 + $0x1], 0 }
   0x2   :  { %11 = vsyncpa [#allocation6], 0 }
   0x3   :  { %12 = vsyncpa [#allocation4], 0 }
   0x4   :  { %14 = vsyncpa [#allocation4 + $0x1], 0  ;;  %s2140_s12 = smov 0   ;;  %s2142_s13 = smov 0  }
   0x5   :  { %s2144_s14 = smov 0   ;;  %s2146_s15 = smov 0  }
   0x6 LB: > { %s2161_s16 = sadd.s32 4294967295, %s2105_s15   ;;  %s1643_s17 = sadd.s32 4294967294, %s2105_s15   ;;  %s2105_s15 = sphi %s2146_s15, %s2777_s15   ;;  %s2101_s14 = sphi %s2144_s14, %s2776_s14   ;;  %s2097_s13 = sphi %s2142_s13, %s2775_s13   ;;  %s2093_s12 = sphi %s2140_s12, %s2774_s12  }
   0x7   : > { %p40_p0 = scmp.ne.s32.totalorder %s2097_s13, %s2093_s12  ;;  %p2728_p1 = scmp.eq.s32.totalorder %s2161_s16, 0 }
   0x8   : > { %p112_p3 = scmp.eq.s32.totalorder %s1643_s17, 1  ;;  %p1644_p5 = scmp.ge.s32.totalorder %s2105_s15, 1 }
   0x9   : > { %p2170_p4 = por %p2728_p1, %p40_p0  ;;  %p119_p7 = scmp.lt.s32.totalorder %s2105_s15, 3 }
   0xa   : > { %p2175_p6 = por %p112_p3, %p40_p0  ;;  %s2107_s21 = smov [#allocation5]  }
   0xb   : > { %s2731_s18 = scalar_select %p2170_p4, 1, 0 }
   0xc   : > { %s2732_s19 = scalar_select %p2175_p6, 1, 0 }
   0xd   : > { %p2180_p8 = pnand %p1644_p5, %p119_p7  ;;  %s131_s22 = sshll.u32 %s2107_s21, 4  ;;  %s2184_s22 = int_to_ptr.vmem [resolvable:$true] %s131_s22 }
   0xe   : > { %s2108_s24 = smov [#allocation7]   ;;  %s1949_s28 = scalar_lea.hbm %s2725_s1, 4096 }
   0xf   : > { %p1773_p9 = pneg %p2180_p8  ;;  %s144_s25 = sshll.u32 %s2108_s24, 4  ;;  %s2195_s25 = int_to_ptr.vmem [resolvable:$true] %s144_s25 }
  0x10   : > { %p1950_p12 = scmp.ne.s32.totalorder %s2725_s1, %s1949_s28  ;;  %p1956_p5 = scmp.lt.u32.totalorder %s1949_s28, %s2725_s1 }
  0x11   : > { %p2191_p11 = pnand %p1773_p9, %p2728_p1 }
  0x13   : > { %p1951_p13 = pneg %p2191_p11 }
  0x15   : > { %p1952_p0 = pnand %p1951_p13, %p1950_p12 }
  0x17   : > { %p1953_p3 = pneg %p1952_p0 }
  0x19   : > { %p1958_p7 = pnand %p1956_p5, %p1953_p3 }
  0x1b   : > { %1961 = shalt.err (!%p1958_p7)
}
  0x1c   : > { %s1962_s6 = scalar_lea.vmem %s2184_s22, 4096  ;;  %p1970_p2 = scmp.lt.s32.totalorder %s2184_s22, %s2184_s22 }
  0x1d   : > { %p1963_p9 = scmp.ne.s32.totalorder %s2184_s22, %s1962_s6  ;;  %p1971_p12 = scmp.lt.s32.totalorder %s1962_s6, %s1962_s6 }
  0x1f   : > { %p1965_p10 = pnand %p1963_p9, %p1951_p13  ;;  %p1972_p0 = por %p1971_p12, %p1970_p2 }
  0x21   : > { %p1966_p1 = pneg %p1965_p10 }
  0x23   : > { %p1973_p6 = pnand %p1972_p0, %p1966_p1 }
  0x25   : > { %1976 = shalt.err (!%p1973_p6)
}
  0x26   : > { %s2109_s7 = smov 256   ;;  %s2110_s8 = smov 16  }
  0x27   : > { %1776 = dma.hbm_to_vmem [thread:$0]  (!%p2191_p11), %s2725_s1, 4096, %s2184_s22, [#allocation6], %s2109_s7, %s2109_s7, %s2110_s8  }
  0x28   : > { %s1977_s21 = scalar_lea.hbm %s2726_s2, 4096 }
  0x29   : > { %p1978_p2 = scmp.ne.s32.totalorder %s2726_s2, %s1977_s21  ;;  %p1984_p10 = scmp.lt.u32.totalorder %s1977_s21, %s2726_s2 }
  0x2b   : > { %p1980_p1 = pnand %p1978_p2, %p1951_p13 }
  0x2d   : > { %p1981_p6 = pneg %p1980_p1 }
  0x2f   : > { %p1986_p3 = pnand %p1984_p10, %p1981_p6 }
  0x31   : > { %1989 = shalt.err (!%p1986_p3)
}
  0x32   : > { %s1990_s22 = scalar_lea.vmem %s2195_s25, 4096  ;;  %p1998_p12 = scmp.lt.s32.totalorder %s2195_s25, %s2195_s25 }
  0x33   : > { %p1991_p5 = scmp.ne.s32.totalorder %s2195_s25, %s1990_s22  ;;  %p1999_p0 = scmp.lt.s32.totalorder %s1990_s22, %s1990_s22 }
  0x35   : > { %p1993_p7 = pnand %p1991_p5, %p1951_p13  ;;  %p2000_p2 = por %p1999_p0, %p1998_p12 }
  0x37   : > { %p1994_p9 = pneg %p1993_p7 }
  0x39   : > { %p2001_p1 = pnand %p2000_p2, %p1994_p9 }
  0x3b   : > { %2004 = shalt.err (!%p2001_p1)
}
  0x3c   : > { %s2111_s29 = smov 128   ;;  %s2112_s30 = smov 8  }
  0x3d   : > { %1779 = dma.hbm_to_vmem [thread:$0]  (!%p2191_p11), %s2726_s2, 4096, %s2195_s25, [#allocation6], %s2111_s29, %s2111_s29, %s2112_s30  }
  0x3e   : > { %s2250_s6 = sadd.s32 1, %s2105_s15   ;;  %s27_s8 = sadd.s32 1, %s2101_s14 }
  0x3f   : > { %s24_s7 = ssub.s32 %s2105_s15, %s2250_s6  ;;  %p34_p6 = scmp.ne.s32.totalorder %s2101_s14, %s2097_s13 }
  0x40   : > { %p25_p13 = scmp.eq.s32.totalorder %s24_s7, 0  ;;  %p35_p10 = scmp.eq.s32.totalorder %s2105_s15, 0 }
  0x41   : > { %p2735_p5 = scmp.eq.s32.totalorder %s2161_s16, 1  ;;  %p1790_p9 = scmp.lt.s32.totalorder %s2105_s15, 2 }
  0x42   : > { %s2259_s9 = scalar_select %p25_p13, %s2101_s14, %s27_s8  }
  0x43   : > { %p36_p3 = por %p35_p10, %p34_p6  ;;  %p2263_p7 = por %p2735_p5, %p34_p6 }
  0x44   : > { %s158_s23 = sand.u32 1, %s2101_s14   ;;  %s1742_s25 = sshll.u32 %s2105_s15, 11 }
  0x45   : > { %s2736_s10 = scalar_select %p2263_p7, 1, 0 }
  0x46   : > { %s1648_s11 = sshll.u32 %s158_s23, 7  ;;  %s2273_s24 = scalar_lea.hbm %s2724_s0, %s1742_s25 }
  0x47   : > { %s162_s26 = scalar_lea.vmem [#allocation2], %s1648_s11  ;;  %p2277_p11 = pnand %p1790_p9, %p36_p3 }
  0x48   : > { %s169_s27 = sshll.u32 %s162_s26, 4  ;;  %s2281_s22 = scalar_lea.sflag [#allocation3], %s158_s23  ;;  %s2275_s27 = int_to_ptr.vmem [resolvable:$true] %s169_s27 }
  0x49   : > { %s2005_s29 = scalar_lea.hbm %s2273_s24, 2048  ;;  %p2007_p0 = pneg %p2277_p11 }
  0x4a   : > { %p2006_p12 = scmp.ne.s32.totalorder %s2273_s24, %s2005_s29  ;;  %s2010_s5 = scalar_lea.hbm %s2724_s0, 4096 }
  0x4b   : > { %p2011_p13 = scmp.lt.u32.totalorder %s2273_s24, %s2724_s0  ;;  %p2012_p6 = scmp.lt.u32.totalorder %s2010_s5, %s2005_s29 }
  0x4c   : > { %p2008_p2 = pnand %p2007_p0, %p2006_p12  ;;  %p2014_p3 = scmp.lt.u32.totalorder %s2005_s29, %s2273_s24 }
  0x4d   : > { %p2013_p10 = por %p2012_p6, %p2011_p13 }
  0x4e   : > { %p2009_p1 = pneg %p2008_p2 }
  0x4f   : > { %p2015_p5 = por %p2014_p3, %p2013_p10 }
  0x51   : > { %p2016_p9 = pnand %p2015_p5, %p2009_p1 }
  0x53   : > { %2019 = shalt.err (!%p2016_p9)
}
  0x54   : > { %s2020_s23 = scalar_lea.vmem %s2275_s27, 2048  ;;  %s2113_s11 = smov [#allocation2]  }
  0x55   : > { %p2021_p12 = scmp.ne.s32.totalorder %s2275_s27, %s2020_s23  ;;  %s2025_s25 = sshll.u32 %s2113_s11, 4  ;;  %s2026_s25 = int_to_ptr.vmem [resolvable:$false] %s2025_s25 }
  0x56   : > { %s2027_s17 = scalar_lea.vmem %s2026_s25, 4096  ;;  %p2028_p4 = scmp.lt.s32.totalorder %s2275_s27, %s2026_s25 }
  0x57   : > { %p2023_p2 = pnand %p2021_p12, %p2007_p0  ;;  %p2029_p13 = scmp.lt.s32.totalorder %s2027_s17, %s2020_s23 }
  0x59   : > { %p2024_p7 = pneg %p2023_p2  ;;  %p2030_p6 = por %p2029_p13, %p2028_p4 }
  0x5b   : > { %p2031_p10 = pnand %p2030_p6, %p2024_p7 }
  0x5d   : > { %2034 = shalt.err (!%p2031_p10)
}
  0x5e   : > { %s2114_s21 = smov 64   ;;  %s2115_s26 = smov 4  }
  0x5f   : > { %1783 = dma.hbm_to_vmem [thread:$0]  (!%p2277_p11), %s2273_s24, 2048, %s2275_s27, %s2281_s22, %s2114_s21, %s2114_s21, %s2115_s26  }
  0x60   : > { %181 = sbr.rel (%p2180_p8) target bundleno = 780 (0x30c), region = 32 }
  0x67   : > { %s2312_s29 = sand.u32 1, %s2097_s13   ;;  %p2738_p4 = scmp.ne.s32.totalorder %s2731_s18, 0 }
  0x68   : > { %s1652_s30 = sshll.u32 %s2312_s29, 7  ;;  %s184_s4 = scalar_lea.sflag [#allocation3], %s2312_s29 }
  0x69   : > { %s2316_s5 = scalar_lea.vmem [#allocation2], %s1652_s30 }
  0x6a   : > { %2080 = dma.done.wait (%p2738_p4), %s184_s4, 2048  }
  0x6b   : > { %2082 = vsyncadd (%p2738_p4), %s184_s4, 4294965248  ;;  %p2739_p7 = scmp.eq.s32.totalorder %s2161_s16, 0 }
  0x6d   : > { %2084 = dma.done.wait (%p2739_p7), [#allocation6], 8192   ;;  %p2740_p8 = pmov %p2739_p7 }
  0x6e   : > { %v2116_v0 = vmov 0   ;;  %v1837_v1 = vld [vmem:[#allocation5 + $0x4] ss:$16 sps:$4 sm:$0xff]   ;;  %v1839_v2 = vld [vmem:[#allocation5] ss:$16 sps:$4 sm:$0xff]   ;;  %v2338_v23 = vld [vmem:[%s2316_s5 + $0x48] sm:$0xff]  }
  0x6f   : > { %2086 = vsyncadd (%p2740_p8), [#allocation6], 4294959104  ;;  %653 = vmatprep.mubr.bf16.mxu1 %v2116_v0  ;;  %573 = vmatprep.mubr.bf16.mxu0 %v2116_v0  ;;  %v1840_v3 = vld [vmem:[#allocation5 + $0x24] ss:$16 sps:$4 sm:$0xff]   ;;  %v1842_v4 = vld [vmem:[#allocation5 + $0x20] ss:$16 sps:$4 sm:$0xff]  }
  0x70   : > { %1745 = vmatprep.subr.bf16.mxu1 %v1837_v1  ;;  %541 = vmatprep.subr.bf16.mxu0 %v1837_v1  ;;  %v1843_v5 = vld [vmem:[#allocation5 + $0x44] ss:$16 sps:$4 sm:$0xff]   ;;  %v1845_v6 = vld [vmem:[#allocation5 + $0x40] ss:$16 sps:$4 sm:$0xff]   ;;  %v1864_v17 = vld [vmem:[#allocation5 + $0xc] ss:$16 sps:$4 sm:$0xff]  }
  0x71   : > { %1753 = vmatpush1.bf16.msra.mxu1 %v1839_v2  ;;  %542 = vmatpush1.bf16.msra.mxu0 %v1839_v2  ;;  %v1846_v7 = vld [vmem:[#allocation5 + $0x64] ss:$16 sps:$4 sm:$0xff]   ;;  %v1848_v8 = vld [vmem:[#allocation5 + $0x60] ss:$16 sps:$4 sm:$0xff]   ;;  %v1862_v20 = vld [vmem:[#allocation5 + $0x8] ss:$16 sps:$4 sm:$0xff]  }
  0x72   : > { %1746 = vmatprep.subr.bf16.mxu1 %v1840_v3  ;;  %543 = vmatprep.subr.bf16.mxu0 %v1840_v3  ;;  %v1849_v9 = vld [vmem:[#allocation5 + $0x84] ss:$16 sps:$4 sm:$0xff]   ;;  %v1851_v10 = vld [vmem:[#allocation5 + $0x80] ss:$16 sps:$4 sm:$0xff]   ;;  %v1868_v21 = vld [vmem:[#allocation5 + $0x2c] ss:$16 sps:$4 sm:$0xff]  }
  0x73   : > { %v1852_v11 = vld [vmem:[#allocation5 + $0xa4] ss:$16 sps:$4 sm:$0xff]   ;;  %v1854_v12 = vld [vmem:[#allocation5 + $0xa0] ss:$16 sps:$4 sm:$0xff]   ;;  %v1866_v22 = vld [vmem:[#allocation5 + $0x28] ss:$16 sps:$4 sm:$0xff]  }
  0x74   : > { %v1855_v13 = vld [vmem:[#allocation5 + $0xc4] ss:$16 sps:$4 sm:$0xff]   ;;  %v1857_v14 = vld [vmem:[#allocation5 + $0xc0] ss:$16 sps:$4 sm:$0xff]   ;;  %v1872_v24 = vld [vmem:[#allocation5 + $0x4c] ss:$16 sps:$4 sm:$0xff]  }
  0x75   : > { %1754 = vmatpush1.bf16.msra.mxu1 %v1842_v4  ;;  %544 = vmatpush1.bf16.msra.mxu0 %v1842_v4  ;;  %v1858_v15 = vld [vmem:[#allocation5 + $0xe4] ss:$16 sps:$4 sm:$0xff]   ;;  %v1860_v16 = vld [vmem:[#allocation5 + $0xe0] ss:$16 sps:$4 sm:$0xff]   ;;  %v1870_v25 = vld [vmem:[#allocation5 + $0x48] ss:$16 sps:$4 sm:$0xff]  }
  0x76   : > { %1747 = vmatprep.subr.bf16.mxu1 %v1843_v5  ;;  %545 = vmatprep.subr.bf16.mxu0 %v1843_v5  ;;  %v2329_v18 = vld [vmem:[%s2316_s5 + $0x40] sm:$0xff]   ;;  %v2342_v26 = vld [vmem:[%s2316_s5 + $0x8] sm:$0xff]   ;;  %v2348_v30 = vld [vmem:[%s2316_s5 + $0x50] sm:$0xff]   ;;  %s1655_s18 = sshll.u32 %s2312_s29, 9  ;;  %s1744_s24 = sshll.u32 %s2161_s16, 13 }
  0x77   : > { %v2332_v19 = vld [vmem:[%s2316_s5] sm:$0xff]   ;;  %v1876_v27 = vld [vmem:[#allocation5 + $0x6c] ss:$16 sps:$4 sm:$0xff]   ;;  %v1874_v28 = vld [vmem:[#allocation5 + $0x68] ss:$16 sps:$4 sm:$0xff]   ;;  %s2607_s20 = scalar_lea.vmem [#allocation8], %s1655_s18  ;;  %s2675_s7 = scalar_lea.hbm %s2727_s3, %s1744_s24 }
  0x78   : > { %v1880_v29 = vld [vmem:[#allocation5 + $0x8c] ss:$16 sps:$4 sm:$0xff]   ;;  %v1895_v31 = vld [vmem:[%s2316_s5 + $0x10] sm:$0xff]   ;;  %v1878_v32 = vld [vmem:[#allocation5 + $0x88] ss:$16 sps:$4 sm:$0xff]   ;;  %s1551_s27 = sshll.u32 %s2607_s20, 4  ;;  %s2677_s27 = int_to_ptr.vmem [resolvable:$true] %s1551_s27 }
  0x79   : > { %1755 = vmatpush1.bf16.msra.mxu1 %v1845_v6  ;;  %546 = vmatpush1.bf16.msra.mxu0 %v1845_v6  ;;  %v1884_v33 = vld [vmem:[#allocation5 + $0xac] ss:$16 sps:$4 sm:$0xff]   ;;  %v1882_v34 = vld [vmem:[#allocation5 + $0xa8] ss:$16 sps:$4 sm:$0xff]   ;;  %v2363_v41 = vld [vmem:[%s2316_s5 + $0x60] sm:$0xff]   ;;  %s1537_s16 = scalar_lea.sflag [#allocation4], %s2312_s29 }
  0x7a   : > { %1748 = vmatprep.subr.bf16.mxu1 %v1846_v7  ;;  %547 = vmatprep.subr.bf16.mxu0 %v1846_v7  ;;  %v1888_v35 = vld [vmem:[#allocation5 + $0xcc] ss:$16 sps:$4 sm:$0xff]   ;;  %v1886_v38 = vld [vmem:[#allocation5 + $0xc8] ss:$16 sps:$4 sm:$0xff]   ;;  %v1897_v42 = vld [vmem:[%s2316_s5 + $0x20] sm:$0xff]   ;;  %s2035_s8 = scalar_lea.vmem %s2677_s27, 8192 }
  0x7b   : > { %v2356_v36 = vld [vmem:[%s2316_s5 + $0x58] sm:$0xff]   ;;  %v2370_v43 = vld [vmem:[%s2316_s5 + $0x68] sm:$0xff]   ;;  %v2377_v45 = vld [vmem:[%s2316_s5 + $0x70] sm:$0xff]   ;;  %p2036_p11 = scmp.ne.s32.totalorder %s2677_s27, %s2035_s8  ;;  %p2771_p0 = scmp.ne.s32.totalorder %s2736_s10, 0 }
  0x7c   : > { %v1896_v37 = vld [vmem:[%s2316_s5 + $0x18] sm:$0xff]   ;;  %v1898_v44 = vld [vmem:[%s2316_s5 + $0x28] sm:$0xff]   ;;  %v1899_v46 = vld [vmem:[%s2316_s5 + $0x30] sm:$0xff]   ;;  %s2117_s23 = smov [#allocation8]  }
  0x7d   : > { %1756 = vmatpush1.bf16.msra.mxu1 %v1848_v8  ;;  %548 = vmatpush1.bf16.msra.mxu0 %v1848_v8  ;;  %v1892_v39 = vld [vmem:[#allocation5 + $0xec] ss:$16 sps:$4 sm:$0xff]   ;;  %v1890_v40 = vld [vmem:[#allocation5 + $0xe8] ss:$16 sps:$4 sm:$0xff]   ;;  %p2037_p1 = pnand %p2036_p11, %p2771_p0  ;;  %s2039_s11 = sshll.u32 %s2117_s23, 4  ;;  %s2040_s11 = int_to_ptr.vmem [resolvable:$false] %s2039_s11 }
  0x7e   : > { %1749 = vmatprep.subr.bf16.mxu1 %v1849_v9  ;;  %549 = vmatprep.subr.bf16.mxu0 %v1849_v9  ;;  %v2384_v47 = vld [vmem:[%s2316_s5 + $0x78] sm:$0xff]   ;;  %v1903_v49 = vld [vmem:[#allocation7 + $0x4] ss:$8 sps:$4 sm:$0xff]   ;;  %v1901_v50 = vld [vmem:[#allocation7] ss:$8 sps:$4 sm:$0xff]   ;;  %s2041_s25 = scalar_lea.vmem %s2040_s11, 16384  ;;  %p2042_p5 = scmp.lt.s32.totalorder %s2677_s27, %s2040_s11 }
  0x7f   : > { %v1900_v48 = vld [vmem:[%s2316_s5 + $0x38] sm:$0xff]   ;;  %v1909_v53 = vld [vmem:[#allocation7 + $0x24] ss:$8 sps:$4 sm:$0xff]   ;;  %v1907_v54 = vld [vmem:[#allocation7 + $0x20] ss:$8 sps:$4 sm:$0xff]   ;;  %p2038_p3 = pneg %p2037_p1  ;;  %p2043_p9 = scmp.lt.s32.totalorder %s2041_s25, %s2035_s8 }
  0x80   : > { %v1904_v51 = vld [vmem:[#allocation7 + $0x10] ss:$8 sps:$4 sm:$0xff]   ;;  %v1906_v52 = vld [vmem:[#allocation7 + $0x14] ss:$8 sps:$4 sm:$0xff]   ;;  %v1915_v57 = vld [vmem:[#allocation7 + $0x44] ss:$8 sps:$4 sm:$0xff]  }
  0x81   : > { %1757 = vmatpush1.bf16.msra.mxu1 %v1851_v10  ;;  %550 = vmatpush1.bf16.msra.mxu0 %v1851_v10  ;;  %v1910_v55 = vld [vmem:[#allocation7 + $0x30] ss:$8 sps:$4 sm:$0xff]   ;;  %v1912_v56 = vld [vmem:[#allocation7 + $0x34] ss:$8 sps:$4 sm:$0xff]   ;;  %v1913_v58 = vld [vmem:[#allocation7 + $0x40] ss:$8 sps:$4 sm:$0xff]   ;;  %p2044_p12 = por %p2043_p9, %p2042_p5 }
  0x82   : > { %1750 = vmatprep.subr.bf16.mxu1 %v1852_v11  ;;  %551 = vmatprep.subr.bf16.mxu0 %v1852_v11  ;;  %v1916_v59 = vld [vmem:[#allocation7 + $0x50] ss:$8 sps:$4 sm:$0xff]   ;;  %v1918_v60 = vld [vmem:[#allocation7 + $0x54] ss:$8 sps:$4 sm:$0xff]   ;;  %v1921_v61 = vld [vmem:[#allocation7 + $0x64] ss:$8 sps:$4 sm:$0xff]  }
  0x83   : > { %v1919_v62 = vld [vmem:[#allocation7 + $0x60] ss:$8 sps:$4 sm:$0xff]   ;;  %v1922_v63 = vld [vmem:[#allocation7 + $0x70] ss:$8 sps:$4 sm:$0xff]   ;;  %v1924_v1 = vld [vmem:[#allocation7 + $0x74] ss:$8 sps:$4 sm:$0xff]   ;;  %p2045_p2 = pnand %p2044_p12, %p2038_p3 }
  0x84   : > { %v1927_v2 = vld [vmem:[#allocation7 + $0x84] ss:$8 sps:$4 sm:$0xff]   ;;  %v1925_v3 = vld [vmem:[#allocation7 + $0x80] ss:$8 sps:$4 sm:$0xff]   ;;  %v1928_v4 = vld [vmem:[#allocation7 + $0x90] ss:$8 sps:$4 sm:$0xff]  }
  0x85   : > { %1758 = vmatpush1.bf16.msra.mxu1 %v1854_v12  ;;  %552 = vmatpush1.bf16.msra.mxu0 %v1854_v12  ;;  %v1930_v5 = vld [vmem:[#allocation7 + $0x94] ss:$8 sps:$4 sm:$0xff]   ;;  %v1933_v6 = vld [vmem:[#allocation7 + $0xa4] ss:$8 sps:$4 sm:$0xff]   ;;  %v1931_v7 = vld [vmem:[#allocation7 + $0xa0] ss:$8 sps:$4 sm:$0xff]  }
  0x86   : > { %1751 = vmatprep.subr.bf16.mxu1 %v1855_v13  ;;  %553 = vmatprep.subr.bf16.mxu0 %v1855_v13  ;;  %v1934_v8 = vld [vmem:[#allocation7 + $0xb0] ss:$8 sps:$4 sm:$0xff]   ;;  %v1936_v9 = vld [vmem:[#allocation7 + $0xb4] ss:$8 sps:$4 sm:$0xff]   ;;  %v1939_v10 = vld [vmem:[#allocation7 + $0xc4] ss:$8 sps:$4 sm:$0xff]  }
  0x87   : > { %v1937_v11 = vld [vmem:[#allocation7 + $0xc0] ss:$8 sps:$4 sm:$0xff]   ;;  %v1940_v12 = vld [vmem:[#allocation7 + $0xd0] ss:$8 sps:$4 sm:$0xff]   ;;  %v1942_v13 = vld [vmem:[#allocation7 + $0xd4] ss:$8 sps:$4 sm:$0xff]  }
  0x89   : > { %1759 = vmatpush1.bf16.msra.mxu1 %v1857_v14  ;;  %554 = vmatpush1.bf16.msra.mxu0 %v1857_v14  ;;  %v1945_v14 = vld [vmem:[#allocation7 + $0xe4] ss:$8 sps:$4 sm:$0xff]  }
  0x8a   : > { %1752 = vmatprep.subr.bf16.mxu1 %v1858_v15  ;;  %555 = vmatprep.subr.bf16.mxu0 %v1858_v15  ;;  %v1943_v15 = vld [vmem:[#allocation7 + $0xe0] ss:$8 sps:$4 sm:$0xff]  }
  0x8d   : > { %1760 = vmatpush1.bf16.msra.mxu1 %v1860_v16  ;;  %556 = vmatpush1.bf16.msra.mxu0 %v1860_v16  ;;  %v1948_v16 = vld [vmem:[#allocation7 + $0xf4] ss:$8 sps:$4 sm:$0xff]  }
  0x8e   : > { %734 = vmatprep.subr.bf16.mxu1 %v1864_v17  ;;  %1215 = vmatprep.subr.bf16.mxu0 %v1903_v49  ;;  %v1946_v17 = vld [vmem:[#allocation7 + $0xf0] ss:$8 sps:$4 sm:$0xff]  }
  0x90   : > { %654 = vmatmul.mubr.bf16.vlgmr.msra.gmra.mrb[0].mxu1 %v2329_v18  ;;  %574 = vmatmul.mubr.bf16.vlgmr.msra.gmra.mrb[0].mxu0 %v2332_v19 }
  0x91   : > { %735 = vmatpush1.bf16.msra.mxu1 %v1862_v20  ;;  %663 = vmatprep.mubr.bf16.mxu1 %v2116_v0 }
  0x92   : > { %736 = vmatprep.subr.bf16.mxu1 %v1868_v21  ;;  %583 = vmatprep.mubr.bf16.mxu0 %v2116_v0 }
  0x93   : > { %1216 = vmatpush1.bf16.msra.mxu0 %v1901_v50 }
  0x94   : > { %1217 = vmatprep.subr.bf16.mxu0 %v1906_v52 }
  0x95   : > { %737 = vmatpush1.bf16.msra.mxu1 %v1866_v22 }
  0x96   : > { %738 = vmatprep.subr.bf16.mxu1 %v1872_v24 }
  0x97   : > { %1218 = vmatpush1.bf16.msra.mxu0 %v1904_v51 }
  0x98   : > { %664 = vmatmul.mubr.bf16.gmra.mrb[4].mxu1 %v2338_v23  ;;  %584 = vmatmul.mubr.bf16.gmra.mrb[4].mxu0 %v2342_v26 }
  0x99   : > { %673 = vmatprep.mubr.bf16.mxu1 %v2116_v0  ;;  %739 = vmatpush1.bf16.msra.mxu1 %v1870_v25 }
  0x9a   : > { %740 = vmatprep.subr.bf16.mxu1 %v1876_v27  ;;  %593 = vmatprep.mubr.bf16.mxu0 %v2116_v0 }
  0x9b   : > { %1219 = vmatprep.subr.bf16.mxu0 %v1909_v53 }
  0x9c   : > { %1220 = vmatpush1.bf16.msra.mxu0 %v1907_v54 }
  0x9d   : > { %741 = vmatpush1.bf16.msra.mxu1 %v1874_v28  ;;  %1221 = vmatprep.subr.bf16.mxu0 %v1912_v56 }
  0x9e   : > { %742 = vmatprep.subr.bf16.mxu1 %v1880_v29 }
  0xa0   : > { %674 = vmatmul.mubr.bf16.gmra.mrb[8].mxu1 %v2348_v30  ;;  %594 = vmatmul.mubr.bf16.gmra.mrb[8].mxu0 %v1895_v31 }
  0xa1   : > { %683 = vmatprep.mubr.bf16.mxu1 %v2116_v0  ;;  %743 = vmatpush1.bf16.msra.mxu1 %v1878_v32 }
  0xa2   : > { %744 = vmatprep.subr.bf16.mxu1 %v1884_v33  ;;  %603 = vmatprep.mubr.bf16.mxu0 %v2116_v0 }
  0xa3   : > { %1222 = vmatpush1.bf16.msra.mxu0 %v1910_v55 }
  0xa4   : > { %1223 = vmatprep.subr.bf16.mxu0 %v1915_v57 }
  0xa5   : > { %745 = vmatpush1.bf16.msra.mxu1 %v1882_v34 }
  0xa6   : > { %746 = vmatprep.subr.bf16.mxu1 %v1888_v35 }
  0xa7   : > { %1224 = vmatpush1.bf16.msra.mxu0 %v1913_v58 }
  0xa8   : > { %684 = vmatmul.mubr.bf16.gmra.mrb[12].mxu1 %v2356_v36  ;;  %604 = vmatmul.mubr.bf16.gmra.mrb[12].mxu0 %v1896_v37 }
  0xa9   : > { %693 = vmatprep.mubr.bf16.mxu1 %v2116_v0  ;;  %747 = vmatpush1.bf16.msra.mxu1 %v1886_v38 }
  0xaa   : > { %748 = vmatprep.subr.bf16.mxu1 %v1892_v39  ;;  %613 = vmatprep.mubr.bf16.mxu0 %v2116_v0 }
  0xab   : > { %1225 = vmatprep.subr.bf16.mxu0 %v1918_v60 }
  0xac   : > { %1226 = vmatpush1.bf16.msra.mxu0 %v1916_v59 }
  0xad   : > { %749 = vmatpush1.bf16.msra.mxu1 %v1890_v40  ;;  %1227 = vmatprep.subr.bf16.mxu0 %v1921_v61 }
  0xb0   : > { %694 = vmatmul.mubr.bf16.gmra.mrb[16].mxu1 %v2363_v41  ;;  %614 = vmatmul.mubr.bf16.gmra.mrb[16].mxu0 %v1897_v42 }
  0xb1   : > { %703 = vmatprep.mubr.bf16.mxu1 %v2116_v0  ;;  %623 = vmatprep.mubr.bf16.mxu0 %v2116_v0 }
  0xb2   : > { %1228 = vmatpush1.bf16.msra.mxu0 %v1919_v62 }
  0xb3   : > { %1229 = vmatprep.subr.bf16.mxu0 %v1924_v1 }
  0xb6   : > { %1230 = vmatpush1.bf16.msra.mxu0 %v1922_v63 }
  0xb7   : > { %1231 = vmatprep.subr.bf16.mxu0 %v1927_v2 }
  0xb8   : > { %704 = vmatmul.mubr.bf16.gmra.mrb[20].mxu1 %v2370_v43  ;;  %624 = vmatmul.mubr.bf16.gmra.mrb[20].mxu0 %v1898_v44 }
  0xb9   : > { %713 = vmatprep.mubr.bf16.mxu1 %v2116_v0  ;;  %633 = vmatprep.mubr.bf16.mxu0 %v2116_v0 }
  0xba   : > { %1232 = vmatpush1.bf16.msra.mxu0 %v1925_v3 }
  0xbb   : > { %1233 = vmatprep.subr.bf16.mxu0 %v1930_v5 }
  0xbe   : > { %1234 = vmatpush1.bf16.msra.mxu0 %v1928_v4 }
  0xbf   : > { %1235 = vmatprep.subr.bf16.mxu0 %v1933_v6 }
  0xc0   : > { %714 = vmatmul.mubr.bf16.gmra.mrb[24].mxu1 %v2377_v45  ;;  %634 = vmatmul.mubr.bf16.gmra.mrb[24].mxu0 %v1899_v46 }
  0xc1   : > { %723 = vmatprep.mubr.bf16.mxu1 %v2116_v0  ;;  %643 = vmatprep.mubr.bf16.mxu0 %v2116_v0 }
  0xc2   : > { %1236 = vmatpush1.bf16.msra.mxu0 %v1931_v7 }
  0xc3   : > { %1237 = vmatprep.subr.bf16.mxu0 %v1936_v9 }
  0xc6   : > { %1238 = vmatpush1.bf16.msra.mxu0 %v1934_v8 }
  0xc7   : > { %1239 = vmatprep.subr.bf16.mxu0 %v1939_v10 }
  0xc8   : > { %724 = vmatmul.mubr.bf16.gmra.mrb[28].mxu1 %v2384_v47  ;;  %644 = vmatmul.mubr.bf16.gmra.mrb[28].mxu0 %v1900_v48 }
  0xc9   : > { %766 = vmatprep.mubr.bf16.mxu1 %v2116_v0 }
  0xca   : > { %1240 = vmatpush1.bf16.msra.mxu0 %v1937_v11 }
  0xcb   : > { %1241 = vmatprep.subr.bf16.mxu0 %v1942_v13 }
  0xce   : > { %1242 = vmatpush1.bf16.msra.mxu0 %v1940_v12 }
  0xcf   : > { %1243 = vmatprep.subr.bf16.mxu0 %v1945_v14 }
  0xd0   : > { %767 = vmatmul.mubr.bf16.vlgmr.msra.gmra.mrb[32].mxu1 %v2332_v19 }
  0xd1   : > { %776 = vmatprep.mubr.bf16.mxu1 %v2116_v0 }
  0xd2   : > { %1244 = vmatpush1.bf16.msra.mxu0 %v1943_v15 }
  0xd3   : > { %1245 = vmatprep.subr.bf16.mxu0 %v1948_v16 }
  0xd6   : > { %1246 = vmatpush1.bf16.msra.mxu0 %v1946_v17 }
  0xd8   : > { %777 = vmatmul.mubr.bf16.gmra.mrb[36].mxu1 %v2342_v26 }
  0xd9   : > { %786 = vmatprep.mubr.bf16.mxu1 %v2116_v0 }
  0xe0   : > { %787 = vmatmul.mubr.bf16.gmra.mrb[40].mxu1 %v1895_v31 }
  0xe1   : > { %796 = vmatprep.mubr.bf16.mxu1 %v2116_v0 }
  0xe8   : > { %797 = vmatmul.mubr.bf16.gmra.mrb[44].mxu1 %v1896_v37 }
  0xe9   : > { %806 = vmatprep.mubr.bf16.mxu1 %v2116_v0 }
  0xf0   : > { %807 = vmatmul.mubr.bf16.gmra.mrb[48].mxu1 %v1897_v42 }
  0xf1   : > { %816 = vmatprep.mubr.bf16.mxu1 %v2116_v0 }
  0xf8   : > { %817 = vmatmul.mubr.bf16.gmra.mrb[52].mxu1 %v1898_v44 }
  0xf9   : > { %826 = vmatprep.mubr.bf16.mxu1 %v2116_v0 }
 0x100   : > { %827 = vmatmul.mubr.bf16.gmra.mrb[56].mxu1 %v1899_v46 }
 0x101   : > { %836 = vmatprep.mubr.bf16.mxu1 %v2116_v0 }
 0x108   : > { %837 = vmatmul.mubr.bf16.gmra.mrb[60].mxu1 %v1900_v48 }
 0x109   : > { %846 = vmatprep.mubr.bf16.mxu1 %v2116_v0 }
 0x110   : > { %847 = vmatmul.mubr.bf16.gmra.mrb[64].mxu1 %v2329_v18 }
 0x111   : > { %856 = vmatprep.mubr.bf16.mxu1 %v2116_v0 }
 0x118   : > { %857 = vmatmul.mubr.bf16.gmra.mrb[68].mxu1 %v2338_v23 }
 0x119   : > { %866 = vmatprep.mubr.bf16.mxu1 %v2116_v0 }
 0x120   : > { %867 = vmatmul.mubr.bf16.gmra.mrb[72].mxu1 %v2348_v30 }
 0x121   : > { %876 = vmatprep.mubr.bf16.mxu1 %v2116_v0 }
 0x128   : > { %877 = vmatmul.mubr.bf16.gmra.mrb[76].mxu1 %v2356_v36 }
 0x129   : > { %886 = vmatprep.mubr.bf16.mxu1 %v2116_v0 }
 0x130   : > { %887 = vmatmul.mubr.bf16.gmra.mrb[80].mxu1 %v2363_v41 }
 0x131   : > { %896 = vmatprep.mubr.bf16.mxu1 %v2116_v0 }
 0x138   : > { %897 = vmatmul.mubr.bf16.gmra.mrb[84].mxu1 %v2370_v43 }
 0x139   : > { %906 = vmatprep.mubr.bf16.mxu1 %v2116_v0 }
 0x140   : > { %907 = vmatmul.mubr.bf16.gmra.mrb[88].mxu1 %v2377_v45 }
 0x141   : > { %916 = vmatprep.mubr.bf16.mxu1 %v2116_v0 }
 0x148   : > { %917 = vmatmul.mubr.bf16.gmra.mrb[92].mxu1 %v2384_v47 }
 0x163   : > { %v2414_v18 = vpop.f32.mrb[0].mxu1  ;;  %v2416_v19 = vpop.f32.mrb[0].mxu0 }
 0x164   : > { %v2418_v20 = vpop.f32.mrb[1].mxu1  ;;  %v2420_v21 = vpop.f32.mrb[1].mxu0 }
 0x165   : > { %v2422_v22 = vpop.f32.mrb[2].mxu1  ;;  %v2424_v23 = vpop.f32.mrb[2].mxu0 }
 0x166   : > { %v2426_v24 = vpop.f32.mrb[3].mxu1  ;;  %v2428_v25 = vpop.f32.mrb[3].mxu0 }
 0x16b   : > { %v2430_v26 = vpop.f32.mrb[4].mxu1  ;;  %v2432_v0 = vpop.f32.mrb[4].mxu0 }
 0x16c   : > { %v2434_v27 = vpop.f32.mrb[5].mxu1  ;;  %v2436_v28 = vpop.f32.mrb[5].mxu0 }
 0x16d   : > { %v2438_v29 = vpop.f32.mrb[6].mxu1  ;;  %v2440_v30 = vpop.f32.mrb[6].mxu0 }
 0x16e   : > { %v2442_v31 = vpop.f32.mrb[7].mxu1  ;;  %v2444_v32 = vpop.f32.mrb[7].mxu0 }
 0x173   : > { %v2446_v33 = vpop.f32.mrb[8].mxu1  ;;  %v2448_v34 = vpop.f32.mrb[8].mxu0 }
 0x174   : > { %v2450_v35 = vpop.f32.mrb[9].mxu1  ;;  %v2452_v36 = vpop.f32.mrb[9].mxu0 }
 0x175   : > { %v2454_v37 = vpop.f32.mrb[10].mxu1  ;;  %v2456_v38 = vpop.f32.mrb[10].mxu0 }
 0x176   : > { %v2458_v39 = vpop.f32.mrb[11].mxu1  ;;  %v2460_v40 = vpop.f32.mrb[11].mxu0 }
 0x17b   : > { %v2462_v41 = vpop.f32.mrb[12].mxu1  ;;  %v2464_v42 = vpop.f32.mrb[12].mxu0 }
 0x17c   : > { %v2466_v43 = vpop.f32.mrb[13].mxu1  ;;  %v2468_v44 = vpop.f32.mrb[13].mxu0 }
 0x17d   : > { %v2470_v45 = vpop.f32.mrb[14].mxu1  ;;  %v2472_v46 = vpop.f32.mrb[14].mxu0 }
 0x17e   : > { %v2474_v47 = vpop.f32.mrb[15].mxu1  ;;  %v2476_v48 = vpop.f32.mrb[15].mxu0 }
 0x183   : > { %v2478_v49 = vpop.f32.mrb[16].mxu1  ;;  %v2480_v50 = vpop.f32.mrb[16].mxu0 }
 0x184   : > { %v2482_v51 = vpop.f32.mrb[17].mxu1  ;;  %v2484_v52 = vpop.f32.mrb[17].mxu0 }
 0x185   : > { %2741 = vst [vmem:[#allocation12_spill] sm:$0xff] %v2482_v51  ;;  %v2486_v53 = vpop.f32.mrb[18].mxu1  ;;  %v2488_v54 = vpop.f32.mrb[18].mxu0 }
 0x186   : > { %2742 = vst [vmem:[#allocation13_spill] sm:$0xff] %v2486_v53  ;;  %v2490_v55 = vpop.f32.mrb[19].mxu1  ;;  %v2492_v56 = vpop.f32.mrb[19].mxu0 }
 0x187   : > { %2743 = vst [vmem:[#allocation14_spill] sm:$0xff] %v2490_v55 }
 0x18b   : > { %v2494_v57 = vpop.f32.mrb[20].mxu1  ;;  %v2496_v58 = vpop.f32.mrb[20].mxu0 }
 0x18c   : > { %2744 = vst [vmem:[#allocation15_spill] sm:$0xff] %v2494_v57  ;;  %v2498_v59 = vpop.f32.mrb[21].mxu1  ;;  %v2500_v60 = vpop.f32.mrb[21].mxu0 }
 0x18d   : > { %2745 = vst [vmem:[#allocation16_spill] sm:$0xff] %v2498_v59  ;;  %v2502_v61 = vpop.f32.mrb[22].mxu1  ;;  %v2504_v62 = vpop.f32.mrb[22].mxu0 }
 0x18e   : > { %2746 = vst [vmem:[#allocation17_spill] sm:$0xff] %v2502_v61  ;;  %v2506_v63 = vpop.f32.mrb[23].mxu1  ;;  %v2508_v1 = vpop.f32.mrb[23].mxu0 }
 0x18f   : > { %2747 = vst [vmem:[#allocation18_spill] sm:$0xff] %v2506_v63 }
 0x193   : > { %v2510_v2 = vpop.f32.mrb[24].mxu1  ;;  %v2512_v3 = vpop.f32.mrb[24].mxu0 }
 0x194   : > { %2748 = vst [vmem:[#allocation19_spill] sm:$0xff] %v2510_v2  ;;  %v2514_v4 = vpop.f32.mrb[25].mxu1  ;;  %v2516_v5 = vpop.f32.mrb[25].mxu0 }
 0x195   : > { %2749 = vst [vmem:[#allocation20_spill] sm:$0xff] %v2514_v4  ;;  %v2518_v6 = vpop.f32.mrb[26].mxu1  ;;  %v2520_v7 = vpop.f32.mrb[26].mxu0 }
 0x196   : > { %2750 = vst [vmem:[#allocation21_spill] sm:$0xff] %v2518_v6  ;;  %v2522_v8 = vpop.f32.mrb[27].mxu1  ;;  %v2524_v9 = vpop.f32.mrb[27].mxu0 }
 0x197   : > { %2751 = vst [vmem:[#allocation22_spill] sm:$0xff] %v2522_v8 }
 0x19b   : > { %v2526_v10 = vpop.f32.mrb[28].mxu1  ;;  %v2528_v11 = vpop.f32.mrb[28].mxu0 }
 0x19c   : > { %2752 = vst [vmem:[#allocation23_spill] sm:$0xff] %v2526_v10  ;;  %v2530_v12 = vpop.f32.mrb[29].mxu1  ;;  %v2532_v13 = vpop.f32.mrb[29].mxu0 }
 0x19d   : > { %2753 = vst [vmem:[#allocation24_spill] sm:$0xff] %v2530_v12  ;;  %v2534_v14 = vpop.f32.mrb[30].mxu1  ;;  %v2536_v15 = vpop.f32.mrb[30].mxu0 }
 0x19e   : > { %2754 = vst [vmem:[#allocation25_spill] sm:$0xff] %v2534_v14  ;;  %v2538_v16 = vpop.f32.mrb[31].mxu1  ;;  %v2540_v17 = vpop.f32.mrb[31].mxu0 }
 0x19f   : > { %2755 = vst [vmem:[#allocation26_spill] sm:$0xff] %v2538_v16 }
 0x1a3   : > { %v768_v6 = vpop.f32.mrb[32].mxu1 }
 0x1a4   : > { %v927_v8 = vmul.f32 %v768_v6, %v2416_v19  ;;  %v770_v4 = vpop.f32.mrb[33].mxu1 }
 0x1a5   : > { %v928_v10 = vmul.f32 %v770_v4, %v2420_v21  ;;  %v772_v2 = vpop.f32.mrb[34].mxu1 }
 0x1a6   : > { %v929_v63 = vmul.f32 %v772_v2, %v2424_v23  ;;  %v774_v12 = vpop.f32.mrb[35].mxu1 }
 0x1a7   : > { %v930_v61 = vmul.f32 %v774_v12, %v2428_v25 }
 0x1a8   : > { %v991_v59 = vpack.c.bf16 %v929_v63, %v927_v8 }
 0x1a9   : > { %v992_v14 = vpack.c.bf16 %v930_v61, %v928_v10 }
 0x1ab   : > { %v778_v57 = vpop.f32.mrb[36].mxu1  ;;  %1247 = vmatprep.mubr.bf16.mxu0 %v992_v14 }
 0x1ac   : > { %v931_v16 = vmul.f32 %v778_v57, %v2432_v0  ;;  %v780_v55 = vpop.f32.mrb[37].mxu1  ;;  %1248 = vmatmul.mubr.bf16.vlgmr.msra.gmra.mrb[32].mxu0 %v991_v59 }
 0x1ad   : > { %v932_v53 = vmul.f32 %v780_v55, %v2436_v28  ;;  %v782_v19 = vpop.f32.mrb[38].mxu1 }
 0x1ae   : > { %v933_v6 = vmul.f32 %v782_v19, %v2440_v30  ;;  %v784_v21 = vpop.f32.mrb[39].mxu1 }
 0x1af   : > { %v934_v4 = vmul.f32 %v784_v21, %v2444_v32 }
 0x1b0   : > { %v993_v23 = vpack.c.bf16 %v933_v6, %v931_v16 }
 0x1b1   : > { %v994_v2 = vpack.c.bf16 %v934_v4, %v932_v53 }
 0x1b3   : > { %v788_v51 = vpop.f32.mrb[40].mxu1  ;;  %1257 = vmatprep.mubr.bf16.mxu0 %v994_v2 }
 0x1b4   : > { %v935_v25 = vmul.f32 %v788_v51, %v2448_v34  ;;  %v790_v61 = vpop.f32.mrb[41].mxu1  ;;  %1258 = vmatmul.mubr.bf16.gmra.mrb[36].mxu0 %v993_v23 }
 0x1b5   : > { %v936_v0 = vmul.f32 %v790_v61, %v2452_v36  ;;  %v792_v57 = vpop.f32.mrb[42].mxu1 }
 0x1b6   : > { %v937_v59 = vmul.f32 %v792_v57, %v2456_v38  ;;  %v794_v28 = vpop.f32.mrb[43].mxu1 }
 0x1b7   : > { %v938_v55 = vmul.f32 %v794_v28, %v2460_v40 }
 0x1b8   : > { %v995_v30 = vpack.c.bf16 %v937_v59, %v935_v25 }
 0x1b9   : > { %v996_v63 = vpack.c.bf16 %v938_v55, %v936_v0 }
 0x1bb   : > { %v798_v8 = vpop.f32.mrb[44].mxu1  ;;  %1267 = vmatprep.mubr.bf16.mxu0 %v996_v63 }
 0x1bc   : > { %v939_v32 = vmul.f32 %v798_v8, %v2464_v42  ;;  %v800_v53 = vpop.f32.mrb[45].mxu1  ;;  %1268 = vmatmul.mubr.bf16.gmra.mrb[40].mxu0 %v995_v30 }
 0x1bd   : > { %v940_v34 = vmul.f32 %v800_v53, %v2468_v44  ;;  %v802_v51 = vpop.f32.mrb[46].mxu1 }
 0x1be   : > { %v941_v10 = vmul.f32 %v802_v51, %v2472_v46  ;;  %v804_v36 = vpop.f32.mrb[47].mxu1 }
 0x1bf   : > { %v942_v12 = vmul.f32 %v804_v36, %v2476_v48 }
 0x1c0   : > { %v997_v38 = vpack.c.bf16 %v941_v10, %v939_v32 }
 0x1c1   : > { %v998_v14 = vpack.c.bf16 %v942_v12, %v940_v34 }
 0x1c3   : > { %v808_v16 = vpop.f32.mrb[48].mxu1  ;;  %1277 = vmatprep.mubr.bf16.mxu0 %v998_v14 }
 0x1c4   : > { %v943_v40 = vmul.f32 %v808_v16, %v2480_v50  ;;  %v810_v19 = vpop.f32.mrb[49].mxu1  ;;  %1278 = vmatmul.mubr.bf16.gmra.mrb[44].mxu0 %v997_v38 }
 0x1c5   : > { %v944_v42 = vmul.f32 %v810_v19, %v2484_v52  ;;  %v812_v6 = vpop.f32.mrb[50].mxu1 }
 0x1c6   : > { %v945_v21 = vmul.f32 %v812_v6, %v2488_v54  ;;  %v814_v44 = vpop.f32.mrb[51].mxu1 }
 0x1c7   : > { %v946_v4 = vmul.f32 %v814_v44, %v2492_v56 }
 0x1c8   : > { %v999_v46 = vpack.c.bf16 %v945_v21, %v943_v40 }
 0x1c9   : > { %v1000_v23 = vpack.c.bf16 %v946_v4, %v944_v42 }
 0x1cb   : > { %v818_v2 = vpop.f32.mrb[52].mxu1  ;;  %1287 = vmatprep.mubr.bf16.mxu0 %v1000_v23 }
 0x1cc   : > { %v947_v48 = vmul.f32 %v818_v2, %v2496_v58  ;;  %v820_v25 = vpop.f32.mrb[53].mxu1  ;;  %1288 = vmatmul.mubr.bf16.gmra.mrb[48].mxu0 %v999_v46 }
 0x1cd   : > { %v948_v50 = vmul.f32 %v820_v25, %v2500_v60  ;;  %v822_v61 = vpop.f32.mrb[54].mxu1 }
 0x1ce   : > { %v949_v0 = vmul.f32 %v822_v61, %v2504_v62  ;;  %v824_v52 = vpop.f32.mrb[55].mxu1 }
 0x1cf   : > { %v950_v57 = vmul.f32 %v824_v52, %v2508_v1 }
 0x1d0   : > { %v1001_v54 = vpack.c.bf16 %v949_v0, %v947_v48 }
 0x1d1   : > { %v1002_v59 = vpack.c.bf16 %v950_v57, %v948_v50 }
 0x1d3   : > { %v828_v28 = vpop.f32.mrb[56].mxu1  ;;  %1297 = vmatprep.mubr.bf16.mxu0 %v1002_v59 }
 0x1d4   : > { %v951_v56 = vmul.f32 %v828_v28, %v2512_v3  ;;  %v830_v55 = vpop.f32.mrb[57].mxu1  ;;  %1298 = vmatmul.mubr.bf16.gmra.mrb[52].mxu0 %v1001_v54 }
 0x1d5   : > { %v952_v58 = vmul.f32 %v830_v55, %v2516_v5  ;;  %v832_v30 = vpop.f32.mrb[58].mxu1 }
 0x1d6   : > { %v953_v63 = vmul.f32 %v832_v30, %v2520_v7  ;;  %v834_v60 = vpop.f32.mrb[59].mxu1  ;;  %v2756_v30 = vld [vmem:[#allocation12_spill] sm:$0xff] }
 0x1d7   : > { %v954_v8 = vmul.f32 %v834_v60, %v2524_v9  ;;  %v2757_v60 = vld [vmem:[#allocation13_spill] sm:$0xff] }
 0x1d8   : > { %v1003_v62 = vpack.c.bf16 %v953_v63, %v951_v56 }
 0x1d9   : > { %v1004_v32 = vpack.c.bf16 %v954_v8, %v952_v58 }
 0x1db   : > { %v838_v53 = vpop.f32.mrb[60].mxu1  ;;  %1307 = vmatprep.mubr.bf16.mxu0 %v1004_v32 }
 0x1dc   : > { %v955_v1 = vmul.f32 %v838_v53, %v2528_v11  ;;  %v840_v34 = vpop.f32.mrb[61].mxu1  ;;  %1308 = vmatmul.mubr.bf16.gmra.mrb[56].mxu0 %v1003_v62  ;;  %v2758_v62 = vld [vmem:[#allocation14_spill] sm:$0xff] }
 0x1dd   : > { %v956_v3 = vmul.f32 %v840_v34, %v2532_v13  ;;  %v842_v51 = vpop.f32.mrb[62].mxu1 }
 0x1de   : > { %v957_v10 = vmul.f32 %v842_v51, %v2536_v15  ;;  %v844_v5 = vpop.f32.mrb[63].mxu1  ;;  %v2760_v51 = vld [vmem:[#allocation16_spill] sm:$0xff] }
 0x1df   : > { %v958_v36 = vmul.f32 %v844_v5, %v2540_v17  ;;  %v2761_v5 = vld [vmem:[#allocation17_spill] sm:$0xff] }
 0x1e0   : > { %v1005_v7 = vpack.c.bf16 %v957_v10, %v955_v1 }
 0x1e1   : > { %v1006_v12 = vpack.c.bf16 %v958_v36, %v956_v3 }
 0x1e3   : > { %v848_v38 = vpop.f32.mrb[64].mxu1  ;;  %1317 = vmatprep.mubr.bf16.mxu0 %v1006_v12  ;;  %v2762_v12 = vld [vmem:[#allocation18_spill] sm:$0xff] }
 0x1e4   : > { %v959_v9 = vmul.f32 %v848_v38, %v2414_v18  ;;  %v850_v14 = vpop.f32.mrb[65].mxu1  ;;  %1318 = vmatmul.mubr.bf16.gmra.mrb[60].mxu0 %v1005_v7 }
 0x1e5   : > { %v960_v11 = vmul.f32 %v850_v14, %v2418_v20  ;;  %v852_v16 = vpop.f32.mrb[66].mxu1 }
 0x1e6   : > { %v961_v40 = vmul.f32 %v852_v16, %v2422_v22  ;;  %v854_v13 = vpop.f32.mrb[67].mxu1  ;;  %v2763_v16 = vld [vmem:[#allocation19_spill] sm:$0xff] }
 0x1e7   : > { %v962_v19 = vmul.f32 %v854_v13, %v2426_v24 }
 0x1e8   : > { %v1007_v15 = vpack.c.bf16 %v961_v40, %v959_v9 }
 0x1e9   : > { %v1008_v42 = vpack.c.bf16 %v962_v19, %v960_v11  ;;  %v2764_v19 = vld [vmem:[#allocation20_spill] sm:$0xff] }
 0x1eb   : > { %v858_v6 = vpop.f32.mrb[68].mxu1  ;;  %1327 = vmatprep.mubr.bf16.mxu0 %v1008_v42 }
 0x1ec   : > { %v963_v17 = vmul.f32 %v858_v6, %v2430_v26  ;;  %v860_v21 = vpop.f32.mrb[69].mxu1  ;;  %1328 = vmatmul.mubr.bf16.gmra.mrb[64].mxu0 %v1007_v15  ;;  %v2765_v6 = vld [vmem:[#allocation21_spill] sm:$0xff] }
 0x1ed   : > { %v964_v18 = vmul.f32 %v860_v21, %v2434_v27  ;;  %v862_v44 = vpop.f32.mrb[70].mxu1 }
 0x1ee   : > { %v965_v4 = vmul.f32 %v862_v44, %v2438_v29  ;;  %v864_v20 = vpop.f32.mrb[71].mxu1 }
 0x1ef   : > { %v966_v46 = vmul.f32 %v864_v20, %v2442_v31 }
 0x1f0   : > { %v1009_v22 = vpack.c.bf16 %v965_v4, %v963_v17 }
 0x1f1   : > { %v1010_v23 = vpack.c.bf16 %v966_v46, %v964_v18  ;;  %v2766_v18 = vld [vmem:[#allocation22_spill] sm:$0xff] }
 0x1f3   : > { %v868_v2 = vpop.f32.mrb[72].mxu1  ;;  %1337 = vmatprep.mubr.bf16.mxu0 %v1010_v23 }
 0x1f4   : > { %v967_v24 = vmul.f32 %v868_v2, %v2446_v33  ;;  %v870_v48 = vpop.f32.mrb[73].mxu1  ;;  %1338 = vmatmul.mubr.bf16.gmra.mrb[68].mxu0 %v1009_v22  ;;  %v2767_v22 = vld [vmem:[#allocation23_spill] sm:$0xff] }
 0x1f5   : > { %v968_v26 = vmul.f32 %v870_v48, %v2450_v35  ;;  %v872_v25 = vpop.f32.mrb[74].mxu1 }
 0x1f6   : > { %v969_v50 = vmul.f32 %v872_v25, %v2454_v37  ;;  %v874_v27 = vpop.f32.mrb[75].mxu1  ;;  %v2769_v25 = vld [vmem:[#allocation25_spill] sm:$0xff] }
 0x1f7   : > { %v970_v61 = vmul.f32 %v874_v27, %v2458_v39 }
 0x1f8   : > { %v1011_v29 = vpack.c.bf16 %v969_v50, %v967_v24  ;;  %v2768_v24 = vld [vmem:[#allocation24_spill] sm:$0xff] }
 0x1f9   : > { %v1012_v0 = vpack.c.bf16 %v970_v61, %v968_v26  ;;  %v2770_v61 = vld [vmem:[#allocation26_spill] sm:$0xff] }
 0x1fb   : > { %v878_v52 = vpop.f32.mrb[76].mxu1  ;;  %1347 = vmatprep.mubr.bf16.mxu0 %v1012_v0 }
 0x1fc   : > { %v971_v31 = vmul.f32 %v878_v52, %v2462_v41  ;;  %v880_v57 = vpop.f32.mrb[77].mxu1  ;;  %1348 = vmatmul.mubr.bf16.gmra.mrb[72].mxu0 %v1011_v29 }
 0x1fd   : > { %v972_v33 = vmul.f32 %v880_v57, %v2466_v43  ;;  %v882_v54 = vpop.f32.mrb[78].mxu1 }
 0x1fe   : > { %v973_v59 = vmul.f32 %v882_v54, %v2470_v45  ;;  %v884_v35 = vpop.f32.mrb[79].mxu1 }
 0x1ff   : > { %v974_v28 = vmul.f32 %v884_v35, %v2474_v47  ;;  %v2759_v47 = vld [vmem:[#allocation15_spill] sm:$0xff] }
 0x200   : > { %v1013_v37 = vpack.c.bf16 %v973_v59, %v971_v31 }
 0x201   : > { %v1014_v56 = vpack.c.bf16 %v974_v28, %v972_v33 }
 0x203   : > { %v888_v55 = vpop.f32.mrb[80].mxu1  ;;  %1357 = vmatprep.mubr.bf16.mxu0 %v1014_v56 }
 0x204   : > { %v975_v39 = vmul.f32 %v888_v55, %v2478_v49  ;;  %v890_v58 = vpop.f32.mrb[81].mxu1  ;;  %1358 = vmatmul.mubr.bf16.gmra.mrb[76].mxu0 %v1013_v37 }
 0x205   : > { %v976_v41 = vmul.f32 %v890_v58, %v2756_v30  ;;  %v892_v63 = vpop.f32.mrb[82].mxu1 }
 0x206   : > { %v977_v8 = vmul.f32 %v892_v63, %v2757_v60  ;;  %v894_v43 = vpop.f32.mrb[83].mxu1 }
 0x207   : > { %v978_v32 = vmul.f32 %v894_v43, %v2758_v62 }
 0x208   : > { %v1015_v45 = vpack.c.bf16 %v977_v8, %v975_v39 }
 0x209   : > { %v1016_v53 = vpack.c.bf16 %v978_v32, %v976_v41 }
 0x20b   : > { %v898_v1 = vpop.f32.mrb[84].mxu1  ;;  %1367 = vmatprep.mubr.bf16.mxu0 %v1016_v53 }
 0x20c   : > { %v979_v34 = vmul.f32 %v898_v1, %v2759_v47  ;;  %v900_v3 = vpop.f32.mrb[85].mxu1  ;;  %1368 = vmatmul.mubr.bf16.gmra.mrb[80].mxu0 %v1015_v45 }
 0x20d   : > { %v980_v49 = vmul.f32 %v900_v3, %v2760_v51  ;;  %v902_v10 = vpop.f32.mrb[86].mxu1 }
 0x20e   : > { %v981_v36 = vmul.f32 %v902_v10, %v2761_v5  ;;  %v904_v7 = vpop.f32.mrb[87].mxu1 }
 0x20f   : > { %v982_v38 = vmul.f32 %v904_v7, %v2762_v12 }
 0x210   : > { %v1017_v9 = vpack.c.bf16 %v981_v36, %v979_v34 }
 0x211   : > { %v1018_v14 = vpack.c.bf16 %v982_v38, %v980_v49 }
 0x213   : > { %v908_v11 = vpop.f32.mrb[88].mxu1  ;;  %1377 = vmatprep.mubr.bf16.mxu0 %v1018_v14 }
 0x214   : > { %v983_v40 = vmul.f32 %v908_v11, %v2763_v16  ;;  %v910_v13 = vpop.f32.mrb[89].mxu1  ;;  %1378 = vmatmul.mubr.bf16.gmra.mrb[84].mxu0 %v1017_v9 }
 0x215   : > { %v984_v15 = vmul.f32 %v910_v13, %v2764_v19  ;;  %v912_v42 = vpop.f32.mrb[90].mxu1 }
 0x216   : > { %v985_v17 = vmul.f32 %v912_v42, %v2765_v6  ;;  %v914_v21 = vpop.f32.mrb[91].mxu1 }
 0x217   : > { %v986_v44 = vmul.f32 %v914_v21, %v2766_v18 }
 0x218   : > { %v1019_v4 = vpack.c.bf16 %v985_v17, %v983_v40 }
 0x219   : > { %v1020_v20 = vpack.c.bf16 %v986_v44, %v984_v15 }
 0x21b   : > { %v918_v46 = vpop.f32.mrb[92].mxu1  ;;  %1387 = vmatprep.mubr.bf16.mxu0 %v1020_v20 }
 0x21c   : > { %v987_v23 = vmul.f32 %v918_v46, %v2767_v22  ;;  %v920_v2 = vpop.f32.mrb[93].mxu1  ;;  %1388 = vmatmul.mubr.bf16.gmra.mrb[88].mxu0 %v1019_v4 }
 0x21d   : > { %v988_v48 = vmul.f32 %v920_v2, %v2768_v24  ;;  %v922_v26 = vpop.f32.mrb[94].mxu1 }
 0x21e   : > { %v989_v50 = vmul.f32 %v922_v26, %v2769_v25  ;;  %v924_v27 = vpop.f32.mrb[95].mxu1 }
 0x21f   : > { %v990_v29 = vmul.f32 %v924_v27, %v2770_v61 }
 0x220   : > { %v1021_v0 = vpack.c.bf16 %v989_v50, %v987_v23 }
 0x221   : > { %v1022_v52 = vpack.c.bf16 %v990_v29, %v988_v48 }
 0x223   : > { %1397 = vmatprep.mubr.bf16.mxu0 %v1022_v52 }
 0x224   : > { %1398 = vmatmul.mubr.bf16.gmra.mrb[92].mxu0 %v1021_v0 }
 0x27f   : > { %v1249_v31 = vpop.f32.mrb[32].mxu0 }
 0x280   : > { %v1408_v57 = vmul.f32 0.0625, %v1249_v31  ;;  %v1251_v33 = vpop.f32.mrb[33].mxu0 }
 0x281   : > { %v1409_v54 = vmul.f32 0.0625, %v1251_v33  ;;  %v1253_v59 = vpop.f32.mrb[34].mxu0 }
 0x282   : > { %1472 = vst [vmem:[%s2607_s20] sm:$0xff] %v1408_v57  ;;  %v1410_v35 = vmul.f32 0.0625, %v1253_v59  ;;  %v1255_v28 = vpop.f32.mrb[35].mxu0 }
 0x283   : > { %1473 = vst [vmem:[%s2607_s20 + $0x8] sm:$0xff] %v1409_v54  ;;  %v1411_v37 = vmul.f32 0.0625, %v1255_v28 }
 0x284   : > { %1474 = vst [vmem:[%s2607_s20 + $0x10] sm:$0xff] %v1410_v35 }
 0x285   : > { %1475 = vst [vmem:[%s2607_s20 + $0x18] sm:$0xff] %v1411_v37 }
 0x287   : > { %v1259_v56 = vpop.f32.mrb[36].mxu0 }
 0x288   : > { %v1412_v55 = vmul.f32 0.0625, %v1259_v56  ;;  %v1261_v39 = vpop.f32.mrb[37].mxu0 }
 0x289   : > { %v1413_v58 = vmul.f32 0.0625, %v1261_v39  ;;  %v1263_v30 = vpop.f32.mrb[38].mxu0 }
 0x28a   : > { %1476 = vst [vmem:[%s2607_s20 + $0x20] sm:$0xff] %v1412_v55  ;;  %v1414_v41 = vmul.f32 0.0625, %v1263_v30  ;;  %v1265_v63 = vpop.f32.mrb[39].mxu0 }
 0x28b   : > { %1477 = vst [vmem:[%s2607_s20 + $0x28] sm:$0xff] %v1413_v58  ;;  %v1415_v60 = vmul.f32 0.0625, %v1265_v63 }
 0x28c   : > { %1478 = vst [vmem:[%s2607_s20 + $0x30] sm:$0xff] %v1414_v41 }
 0x28d   : > { %1479 = vst [vmem:[%s2607_s20 + $0x38] sm:$0xff] %v1415_v60 }
 0x28f   : > { %v1269_v8 = vpop.f32.mrb[40].mxu0 }
 0x290   : > { %v1416_v43 = vmul.f32 0.0625, %v1269_v8  ;;  %v1271_v62 = vpop.f32.mrb[41].mxu0 }
 0x291   : > { %v1417_v32 = vmul.f32 0.0625, %v1271_v62  ;;  %v1273_v45 = vpop.f32.mrb[42].mxu0 }
 0x292   : > { %1480 = vst [vmem:[%s2607_s20 + $0x40] sm:$0xff] %v1416_v43  ;;  %v1418_v53 = vmul.f32 0.0625, %v1273_v45  ;;  %v1275_v1 = vpop.f32.mrb[43].mxu0 }
 0x293   : > { %1481 = vst [vmem:[%s2607_s20 + $0x48] sm:$0xff] %v1417_v32  ;;  %v1419_v47 = vmul.f32 0.0625, %v1275_v1 }
 0x294   : > { %1482 = vst [vmem:[%s2607_s20 + $0x50] sm:$0xff] %v1418_v53 }
 0x295   : > { %1483 = vst [vmem:[%s2607_s20 + $0x58] sm:$0xff] %v1419_v47 }
 0x297   : > { %v1279_v34 = vpop.f32.mrb[44].mxu0 }
 0x298   : > { %v1420_v3 = vmul.f32 0.0625, %v1279_v34  ;;  %v1281_v51 = vpop.f32.mrb[45].mxu0 }
 0x299   : > { %v1421_v49 = vmul.f32 0.0625, %v1281_v51  ;;  %v1283_v10 = vpop.f32.mrb[46].mxu0 }
 0x29a   : > { %1484 = vst [vmem:[%s2607_s20 + $0x60] sm:$0xff] %v1420_v3  ;;  %v1422_v5 = vmul.f32 0.0625, %v1283_v10  ;;  %v1285_v36 = vpop.f32.mrb[47].mxu0 }
 0x29b   : > { %1485 = vst [vmem:[%s2607_s20 + $0x68] sm:$0xff] %v1421_v49  ;;  %v1423_v7 = vmul.f32 0.0625, %v1285_v36 }
 0x29c   : > { %1486 = vst [vmem:[%s2607_s20 + $0x70] sm:$0xff] %v1422_v5 }
 0x29d   : > { %1487 = vst [vmem:[%s2607_s20 + $0x78] sm:$0xff] %v1423_v7 }
 0x29f   : > { %v1289_v12 = vpop.f32.mrb[48].mxu0 }
 0x2a0   : > { %v1424_v38 = vmul.f32 0.0625, %v1289_v12  ;;  %v1291_v9 = vpop.f32.mrb[49].mxu0 }
 0x2a1   : > { %v1425_v14 = vmul.f32 0.0625, %v1291_v9  ;;  %v1293_v11 = vpop.f32.mrb[50].mxu0 }
 0x2a2   : > { %1488 = vst [vmem:[%s2607_s20 + $0x80] sm:$0xff] %v1424_v38  ;;  %v1426_v16 = vmul.f32 0.0625, %v1293_v11  ;;  %v1295_v40 = vpop.f32.mrb[51].mxu0 }
 0x2a3   : > { %1489 = vst [vmem:[%s2607_s20 + $0x88] sm:$0xff] %v1425_v14  ;;  %v1427_v13 = vmul.f32 0.0625, %v1295_v40 }
 0x2a4   : > { %1490 = vst [vmem:[%s2607_s20 + $0x90] sm:$0xff] %v1426_v16 }
 0x2a5   : > { %1491 = vst [vmem:[%s2607_s20 + $0x98] sm:$0xff] %v1427_v13 }
 0x2a7   : > { %v1299_v19 = vpop.f32.mrb[52].mxu0 }
 0x2a8   : > { %v1428_v15 = vmul.f32 0.0625, %v1299_v19  ;;  %v1301_v42 = vpop.f32.mrb[53].mxu0 }
 0x2a9   : > { %v1429_v6 = vmul.f32 0.0625, %v1301_v42  ;;  %v1303_v17 = vpop.f32.mrb[54].mxu0 }
 0x2aa   : > { %1492 = vst [vmem:[%s2607_s20 + $0xa0] sm:$0xff] %v1428_v15  ;;  %v1430_v21 = vmul.f32 0.0625, %v1303_v17  ;;  %v1305_v18 = vpop.f32.mrb[55].mxu0 }
 0x2ab   : > { %1493 = vst [vmem:[%s2607_s20 + $0xa8] sm:$0xff] %v1429_v6  ;;  %v1431_v44 = vmul.f32 0.0625, %v1305_v18 }
 0x2ac   : > { %1494 = vst [vmem:[%s2607_s20 + $0xb0] sm:$0xff] %v1430_v21 }
 0x2ad   : > { %1495 = vst [vmem:[%s2607_s20 + $0xb8] sm:$0xff] %v1431_v44 }
 0x2af   : > { %v1309_v4 = vpop.f32.mrb[56].mxu0 }
 0x2b0   : > { %v1432_v20 = vmul.f32 0.0625, %v1309_v4  ;;  %v1311_v46 = vpop.f32.mrb[57].mxu0 }
 0x2b1   : > { %v1433_v22 = vmul.f32 0.0625, %v1311_v46  ;;  %v1313_v23 = vpop.f32.mrb[58].mxu0 }
 0x2b2   : > { %1496 = vst [vmem:[%s2607_s20 + $0xc0] sm:$0xff] %v1432_v20  ;;  %v1434_v2 = vmul.f32 0.0625, %v1313_v23  ;;  %v1315_v24 = vpop.f32.mrb[59].mxu0 }
 0x2b3   : > { %1497 = vst [vmem:[%s2607_s20 + $0xc8] sm:$0xff] %v1433_v22  ;;  %v1435_v48 = vmul.f32 0.0625, %v1315_v24 }
 0x2b4   : > { %1498 = vst [vmem:[%s2607_s20 + $0xd0] sm:$0xff] %v1434_v2 }
 0x2b5   : > { %1499 = vst [vmem:[%s2607_s20 + $0xd8] sm:$0xff] %v1435_v48 }
 0x2b7   : > { %v1319_v26 = vpop.f32.mrb[60].mxu0 }
 0x2b8   : > { %v1436_v25 = vmul.f32 0.0625, %v1319_v26  ;;  %v1321_v50 = vpop.f32.mrb[61].mxu0 }
 0x2b9   : > { %v1437_v27 = vmul.f32 0.0625, %v1321_v50  ;;  %v1323_v61 = vpop.f32.mrb[62].mxu0 }
 0x2ba   : > { %1500 = vst [vmem:[%s2607_s20 + $0xe0] sm:$0xff] %v1436_v25  ;;  %v1438_v29 = vmul.f32 0.0625, %v1323_v61  ;;  %v1325_v0 = vpop.f32.mrb[63].mxu0 }
 0x2bb   : > { %1501 = vst [vmem:[%s2607_s20 + $0xe8] sm:$0xff] %v1437_v27  ;;  %v1439_v52 = vmul.f32 0.0625, %v1325_v0 }
 0x2bc   : > { %1502 = vst [vmem:[%s2607_s20 + $0xf0] sm:$0xff] %v1438_v29 }
 0x2bd   : > { %1503 = vst [vmem:[%s2607_s20 + $0xf8] sm:$0xff] %v1439_v52 }
 0x2bf   : > { %v1329_v31 = vpop.f32.mrb[64].mxu0 }
 0x2c0   : > { %v1440_v57 = vmul.f32 0.0625, %v1329_v31  ;;  %v1331_v33 = vpop.f32.mrb[65].mxu0 }
 0x2c1   : > { %v1441_v54 = vmul.f32 0.0625, %v1331_v33  ;;  %v1333_v59 = vpop.f32.mrb[66].mxu0 }
 0x2c2   : > { %1504 = vst [vmem:[%s2607_s20 + $0x100] sm:$0xff] %v1440_v57  ;;  %v1442_v35 = vmul.f32 0.0625, %v1333_v59  ;;  %v1335_v28 = vpop.f32.mrb[67].mxu0 }
 0x2c3   : > { %1505 = vst [vmem:[%s2607_s20 + $0x108] sm:$0xff] %v1441_v54  ;;  %v1443_v37 = vmul.f32 0.0625, %v1335_v28 }
 0x2c4   : > { %1506 = vst [vmem:[%s2607_s20 + $0x110] sm:$0xff] %v1442_v35 }
 0x2c5   : > { %1507 = vst [vmem:[%s2607_s20 + $0x118] sm:$0xff] %v1443_v37 }
 0x2c7   : > { %v1339_v56 = vpop.f32.mrb[68].mxu0 }
 0x2c8   : > { %v1444_v55 = vmul.f32 0.0625, %v1339_v56  ;;  %v1341_v39 = vpop.f32.mrb[69].mxu0 }
 0x2c9   : > { %v1445_v58 = vmul.f32 0.0625, %v1341_v39  ;;  %v1343_v30 = vpop.f32.mrb[70].mxu0 }
 0x2ca   : > { %1508 = vst [vmem:[%s2607_s20 + $0x120] sm:$0xff] %v1444_v55  ;;  %v1446_v41 = vmul.f32 0.0625, %v1343_v30  ;;  %v1345_v63 = vpop.f32.mrb[71].mxu0 }
 0x2cb   : > { %1509 = vst [vmem:[%s2607_s20 + $0x128] sm:$0xff] %v1445_v58  ;;  %v1447_v60 = vmul.f32 0.0625, %v1345_v63 }
 0x2cc   : > { %1510 = vst [vmem:[%s2607_s20 + $0x130] sm:$0xff] %v1446_v41 }
 0x2cd   : > { %1511 = vst [vmem:[%s2607_s20 + $0x138] sm:$0xff] %v1447_v60 }
 0x2cf   : > { %v1349_v8 = vpop.f32.mrb[72].mxu0 }
 0x2d0   : > { %v1448_v43 = vmul.f32 0.0625, %v1349_v8  ;;  %v1351_v62 = vpop.f32.mrb[73].mxu0 }
 0x2d1   : > { %v1449_v32 = vmul.f32 0.0625, %v1351_v62  ;;  %v1353_v45 = vpop.f32.mrb[74].mxu0 }
 0x2d2   : > { %1512 = vst [vmem:[%s2607_s20 + $0x140] sm:$0xff] %v1448_v43  ;;  %v1450_v53 = vmul.f32 0.0625, %v1353_v45  ;;  %v1355_v1 = vpop.f32.mrb[75].mxu0 }
 0x2d3   : > { %1513 = vst [vmem:[%s2607_s20 + $0x148] sm:$0xff] %v1449_v32  ;;  %v1451_v47 = vmul.f32 0.0625, %v1355_v1 }
 0x2d4   : > { %1514 = vst [vmem:[%s2607_s20 + $0x150] sm:$0xff] %v1450_v53 }
 0x2d5   : > { %1515 = vst [vmem:[%s2607_s20 + $0x158] sm:$0xff] %v1451_v47 }
 0x2d7   : > { %v1359_v34 = vpop.f32.mrb[76].mxu0 }
 0x2d8   : > { %v1452_v3 = vmul.f32 0.0625, %v1359_v34  ;;  %v1361_v51 = vpop.f32.mrb[77].mxu0 }
 0x2d9   : > { %v1453_v49 = vmul.f32 0.0625, %v1361_v51  ;;  %v1363_v10 = vpop.f32.mrb[78].mxu0 }
 0x2da   : > { %1516 = vst [vmem:[%s2607_s20 + $0x160] sm:$0xff] %v1452_v3  ;;  %v1454_v5 = vmul.f32 0.0625, %v1363_v10  ;;  %v1365_v36 = vpop.f32.mrb[79].mxu0 }
 0x2db   : > { %1517 = vst [vmem:[%s2607_s20 + $0x168] sm:$0xff] %v1453_v49  ;;  %v1455_v7 = vmul.f32 0.0625, %v1365_v36 }
 0x2dc   : > { %1518 = vst [vmem:[%s2607_s20 + $0x170] sm:$0xff] %v1454_v5 }
 0x2dd   : > { %1519 = vst [vmem:[%s2607_s20 + $0x178] sm:$0xff] %v1455_v7 }
 0x2df   : > { %v1369_v12 = vpop.f32.mrb[80].mxu0 }
 0x2e0   : > { %v1456_v38 = vmul.f32 0.0625, %v1369_v12  ;;  %v1371_v9 = vpop.f32.mrb[81].mxu0 }
 0x2e1   : > { %v1457_v14 = vmul.f32 0.0625, %v1371_v9  ;;  %v1373_v11 = vpop.f32.mrb[82].mxu0 }
 0x2e2   : > { %1520 = vst [vmem:[%s2607_s20 + $0x180] sm:$0xff] %v1456_v38  ;;  %v1458_v16 = vmul.f32 0.0625, %v1373_v11  ;;  %v1375_v40 = vpop.f32.mrb[83].mxu0 }
 0x2e3   : > { %1521 = vst [vmem:[%s2607_s20 + $0x188] sm:$0xff] %v1457_v14  ;;  %v1459_v13 = vmul.f32 0.0625, %v1375_v40 }
 0x2e4   : > { %1522 = vst [vmem:[%s2607_s20 + $0x190] sm:$0xff] %v1458_v16 }
 0x2e5   : > { %1523 = vst [vmem:[%s2607_s20 + $0x198] sm:$0xff] %v1459_v13 }
 0x2e7   : > { %v1379_v19 = vpop.f32.mrb[84].mxu0 }
 0x2e8   : > { %v1460_v15 = vmul.f32 0.0625, %v1379_v19  ;;  %v1381_v42 = vpop.f32.mrb[85].mxu0 }
 0x2e9   : > { %v1461_v6 = vmul.f32 0.0625, %v1381_v42  ;;  %v1383_v17 = vpop.f32.mrb[86].mxu0 }
 0x2ea   : > { %1524 = vst [vmem:[%s2607_s20 + $0x1a0] sm:$0xff] %v1460_v15  ;;  %v1462_v21 = vmul.f32 0.0625, %v1383_v17  ;;  %v1385_v18 = vpop.f32.mrb[87].mxu0 }
 0x2eb   : > { %1525 = vst [vmem:[%s2607_s20 + $0x1a8] sm:$0xff] %v1461_v6  ;;  %v1463_v44 = vmul.f32 0.0625, %v1385_v18 }
 0x2ec   : > { %1526 = vst [vmem:[%s2607_s20 + $0x1b0] sm:$0xff] %v1462_v21 }
 0x2ed   : > { %1527 = vst [vmem:[%s2607_s20 + $0x1b8] sm:$0xff] %v1463_v44 }
 0x2ef   : > { %v1389_v4 = vpop.f32.mrb[88].mxu0 }
 0x2f0   : > { %v1464_v20 = vmul.f32 0.0625, %v1389_v4  ;;  %v1391_v46 = vpop.f32.mrb[89].mxu0 }
 0x2f1   : > { %v1465_v22 = vmul.f32 0.0625, %v1391_v46  ;;  %v1393_v23 = vpop.f32.mrb[90].mxu0 }
 0x2f2   : > { %1528 = vst [vmem:[%s2607_s20 + $0x1c0] sm:$0xff] %v1464_v20  ;;  %v1466_v2 = vmul.f32 0.0625, %v1393_v23  ;;  %v1395_v24 = vpop.f32.mrb[91].mxu0 }
 0x2f3   : > { %1529 = vst [vmem:[%s2607_s20 + $0x1c8] sm:$0xff] %v1465_v22  ;;  %v1467_v48 = vmul.f32 0.0625, %v1395_v24 }
 0x2f4   : > { %1530 = vst [vmem:[%s2607_s20 + $0x1d0] sm:$0xff] %v1466_v2 }
 0x2f5   : > { %1531 = vst [vmem:[%s2607_s20 + $0x1d8] sm:$0xff] %v1467_v48 }
 0x2f7   : > { %v1399_v26 = vpop.f32.mrb[92].mxu0 }
 0x2f8   : > { %v1468_v25 = vmul.f32 0.0625, %v1399_v26  ;;  %v1401_v50 = vpop.f32.mrb[93].mxu0 }
 0x2f9   : > { %v1469_v27 = vmul.f32 0.0625, %v1401_v50  ;;  %v1403_v61 = vpop.f32.mrb[94].mxu0 }
 0x2fa   : > { %1532 = vst [vmem:[%s2607_s20 + $0x1e0] sm:$0xff] %v1468_v25  ;;  %v1470_v29 = vmul.f32 0.0625, %v1403_v61  ;;  %v1405_v0 = vpop.f32.mrb[95].mxu0 }
 0x2fb   : > { %1533 = vst [vmem:[%s2607_s20 + $0x1e8] sm:$0xff] %v1469_v27  ;;  %v1471_v52 = vmul.f32 0.0625, %v1405_v0 }
 0x2fc   : > { %1534 = vst [vmem:[%s2607_s20 + $0x1f0] sm:$0xff] %v1470_v29 }
 0x2fd   : > { %1535 = vst [vmem:[%s2607_s20 + $0x1f8] sm:$0xff] %v1471_v52 }
 0x2fe   : > { %2048 = shalt.err (!%p2045_p2)
}
 0x2ff   : > { %s2049_s17 = scalar_lea.hbm %s2675_s7, 8192  ;;  %s2053_s30 = scalar_lea.hbm %s2727_s3, 16384 }
 0x300   : > { %p2050_p13 = scmp.ne.s32.totalorder %s2675_s7, %s2049_s17  ;;  %p2054_p4 = scmp.lt.u32.totalorder %s2675_s7, %s2727_s3 }
 0x301   : > { %p2055_p7 = scmp.lt.u32.totalorder %s2053_s30, %s2049_s17  ;;  %p2057_p11 = scmp.lt.u32.totalorder %s2049_s17, %s2675_s7 }
 0x302   : > { %p2051_p6 = pnand %p2050_p13, %p2771_p0 }
 0x303   : > { %p2056_p8 = por %p2055_p7, %p2054_p4 }
 0x304   : > { %p2052_p10 = pneg %p2051_p6 }
 0x305   : > { %p2058_p1 = por %p2057_p11, %p2056_p8 }
 0x307   : > { %p2059_p3 = pnand %p2058_p1, %p2052_p10 }
 0x309   : > { %2062 = shalt.err (!%p2059_p3)
}
 0x30a   : > { %s2118_s18 = smov 256   ;;  %s2119_s20 = smov 16  }
 0x30b   : > { %1771 = dma.vmem_to_hbm [thread:$0]  (%p2771_p0), %s2677_s27, 8192, %s2675_s7, %s1537_s16, %s2118_s18, %s2118_s18, %s2119_s20  }
 0x30c PF: > { %s1566_s24 = sand.u32 1, %s2093_s12   ;;  %p2772_p5 = scmp.ne.s32.totalorder %s2732_s19, 0 }
 0x30d   : > { %p2773_p9 = scmp.ge.s32.totalorder %s2105_s15, 2  ;;  %s1567_s28 = scalar_lea.sflag [#allocation4], %s1566_s24 }
 0x30f   : > { %p1785_p12 = pnand %p2773_p9, %p2772_p5 }
 0x311   : > { %2088 = dma.done.wait (!%p1785_p12), %s1567_s28, 8192  }
 0x312   : > { %2090 = vsyncadd (!%p1785_p12), %s1567_s28, 4294959104  ;;  %p17_p2 = scmp.ge.s32.totalorder %s2250_s6, 4   ;;  %s2774_s12 = smov %s2097_s13 }
 0x313   : > { %s2775_s13 = smov %s2101_s14  ;;  %s2776_s14 = smov %s2259_s9 }
 0x314   : > { %s2777_s15 = smov %s2250_s6  ;;  %19 = sbr.rel (!%p17_p2) target bundleno = 6 (0x6), region = 85 }
 0x31b   :  { %1572 = vsyncpa [#allocation3], 1 }
 0x31c   :  { %1574 = vsyncpa [#allocation3 + $0x1], 1 }
 0x31d   :  { %1575 = vsyncpa [#allocation6], 1 }
 0x31e   :  { %1576 = vsyncpa [#allocation4], 1 }
 0x31f   :  { %1578 = vsyncpa [#allocation4 + $0x1], 1 }

</bundles_post_ra>
